<compile_context>
chip_gen: v7x
topology: tpu7x:2x2x1
jax: 0.10.0
libtpu: 0.0.40
codegen_flags: <defaults>
</compile_context>

<pallas_src>
import functools

import jax
import jax.numpy as jnp
from jax.experimental import pallas as pl
from jax.experimental.pallas import tpu as pltpu

jax.config.update("jax_default_matmul_precision", "highest")

_LN_EPS = 1e-5  # nn.LayerNorm default eps


def _attention_kernel(x_ref, g_ref, b_ref, wq_ref, wk_ref, wv_ref, wo_ref,
                      o_ref, *, heads, scale):
    # x_ref  : (1, N, dim)     current batch element
    # g_ref  : (1, dim)        LayerNorm gamma
    # b_ref  : (1, dim)        LayerNorm beta
    # wq/wk/wv_ref : (H, dim, d)   per-head projection weight stacks
    # wo_ref : (H, d, dim)     per-head slices of the output projection
    # o_ref  : (1, N, dim)     output block for this batch element

    # ---- LayerNorm (computed once, reused by every head) ----
    x = x_ref[0].astype(jnp.float32)                       # (N, dim)
    mu = jnp.mean(x, axis=-1, keepdims=True)
    xc = x - mu
    var = jnp.mean(xc * xc, axis=-1, keepdims=True)
    inv = jax.lax.rsqrt(var + _LN_EPS)                     # EUP rsqrt
    xn = (xc * inv) * g_ref[...].astype(jnp.float32) \
        + b_ref[...].astype(jnp.float32)                   # (N, dim)

    # ---- per-head attention, accumulated into the output projection ----
    acc = jnp.zeros((x.shape[0], x.shape[1]), jnp.float32)  # (N, dim)
    for h in range(heads):                                   # static unroll
        q = jnp.dot(xn, wq_ref[h], preferred_element_type=jnp.float32)  # (N, d)
        k = jnp.dot(xn, wk_ref[h], preferred_element_type=jnp.float32)  # (N, d)
        v = jnp.dot(xn, wv_ref[h], preferred_element_type=jnp.float32)  # (N, d)

        # scores = (q @ k^T) * scale   (contract feature axis, no transpose)
        s = jax.lax.dot_general(q, k, (((1,), (1,)), ((), ())),
                                preferred_element_type=jnp.float32)      # (N, N)
        s = s * scale
        s = s - jnp.max(s, axis=-1, keepdims=True)
        p = jnp.exp(s)
        denom = jnp.sum(p, axis=-1, keepdims=True)                        # (N, 1)
        ctx = jnp.dot(p, v, preferred_element_type=jnp.float32)           # (N, d)
        ctx = ctx * pl.reciprocal(denom, approx=False)

        acc = acc + jnp.dot(ctx, wo_ref[h],
                            preferred_element_type=jnp.float32)          # (N, dim)

    o_ref[0] = acc.astype(o_ref.dtype)   # single writeback per batch element


def attention_forward(x, gamma, beta, wqkv, wout, *, heads, dim_head):
    """x: [B, N, dim]; wqkv: [dim, 3*H*d]; wout: [H*d, dim] -> [B, N, dim]."""
    B, N, dim = x.shape
    inner = heads * dim_head
    assert wqkv.shape == (dim, 3 * inner)
    assert wout.shape == (inner, dim)
    scale = dim_head ** -0.5

    # Pure layout plumbing on the JAX side: per-head weight stacks so every
    # kernel block covers full last-two dims (lane-dense tiles).
    wq = wqkv[:, 0 * inner:1 * inner].reshape(dim, heads, dim_head).transpose(1, 0, 2)
    wk = wqkv[:, 1 * inner:2 * inner].reshape(dim, heads, dim_head).transpose(1, 0, 2)
    wv = wqkv[:, 2 * inner:3 * inner].reshape(dim, heads, dim_head).transpose(1, 0, 2)
    wo = wout.reshape(heads, dim_head, dim)                  # (H, d, dim)

    gamma2 = gamma.reshape(1, dim)
    beta2 = beta.reshape(1, dim)

    kernel = functools.partial(_attention_kernel, heads=heads, scale=scale)

    return pl.pallas_call(
        kernel,
        out_shape=jax.ShapeDtypeStruct((B, N, dim), x.dtype),
        grid_spec=pltpu.PrefetchScalarGridSpec(
            num_scalar_prefetch=0,
            grid=(B,),
            in_specs=[
                pl.BlockSpec((1, N, dim), lambda b: (b, 0, 0)),              # x[b]
                pl.BlockSpec((1, dim), lambda b: (0, 0)),                    # gamma
                pl.BlockSpec((1, dim), lambda b: (0, 0)),                    # beta
                pl.BlockSpec((heads, dim, dim_head), lambda b: (0, 0, 0)),   # Wq
                pl.BlockSpec((heads, dim, dim_head), lambda b: (0, 0, 0)),   # Wk
                pl.BlockSpec((heads, dim, dim_head), lambda b: (0, 0, 0)),   # Wv
                pl.BlockSpec((heads, dim_head, dim), lambda b: (0, 0, 0)),   # Wo
            ],
            out_specs=pl.BlockSpec((1, N, dim), lambda b: (b, 0, 0)),
        ),
        compiler_params=pltpu.CompilerParams(
            dimension_semantics=("parallel",),
        ),
    )(x, gamma2, beta2, wq, wk, wv, wo)


def _reference(x, gamma, beta, wqkv, wout, *, heads, dim_head):
    # Pure-JAX replica of the PyTorch forward.
    B, N, dim = x.shape
    xf = x.astype(jnp.float32)
    mu = jnp.mean(xf, axis=-1, keepdims=True)
    xc = xf - mu
    var = jnp.mean(xc * xc, axis=-1, keepdims=True)
    xn = xc / jnp.sqrt(var + _LN_EPS) * gamma + beta
    qkv = xn @ wqkv
    q, k, v = jnp.split(qkv, 3, axis=-1)

    def split_heads(t):
        return t.reshape(B, N, heads, dim_head).transpose(0, 2, 1, 3)

    q, k, v = map(split_heads, (q, k, v))
    dots = jnp.einsum("bhnd,bhmd->bhnm", q, k) * dim_head ** -0.5
    attn = jax.nn.softmax(dots, axis=-1)
    out = jnp.einsum("bhnm,bhmd->bhnd", attn, v)
    out = out.transpose(0, 2, 1, 3).reshape(B, N, heads * dim_head)
    return out @ wout


if __name__ == "__main__":
    key = jax.random.PRNGKey(0)
    B, N, dim = 2, 8, 32
    heads, dim_head = 4, 16
    inner = heads * dim_head

    ks = jax.random.split(key, 5)
    x = jax.random.normal(ks[0], (B, N, dim), dtype=jnp.float32)
    gamma = 1.0 + 0.1 * jax.random.normal(ks[1], (dim,), dtype=jnp.float32)
    beta = 0.1 * jax.random.normal(ks[2], (dim,), dtype=jnp.float32)
    wqkv = jax.random.normal(ks[3], (dim, 3 * inner), dtype=jnp.float32) / jnp.sqrt(dim)
    wout = jax.random.normal(ks[4], (inner, dim), dtype=jnp.float32) / jnp.sqrt(inner)

    y = attention_forward(x, gamma, beta, wqkv, wout, heads=heads, dim_head=dim_head)
    jax.block_until_ready(y)

    ref = _reference(x, gamma, beta, wqkv, wout, heads=heads, dim_head=dim_head)
    assert y.shape == ref.shape, (y.shape, ref.shape)
    max_err = float(jnp.max(jnp.abs(y - ref)))
    assert jnp.allclose(y, ref, atol=2e-2, rtol=2e-2), ("max abs err", max_err)
    print("KERNEL_OK")
</pallas_src>

<mosaic_0001>
module attributes {stable_mosaic.version = 11 : i64} {
  func.func @_attention_kernel(%arg0: i32, %arg1: memref<1x8x32xf32, #tpu.memory_space<vmem>>, %arg2: memref<1x32xf32, #tpu.memory_space<vmem>>, %arg3: memref<1x32xf32, #tpu.memory_space<vmem>>, %arg4: memref<4x32x16xf32, #tpu.memory_space<vmem>>, %arg5: memref<4x32x16xf32, #tpu.memory_space<vmem>>, %arg6: memref<4x32x16xf32, #tpu.memory_space<vmem>>, %arg7: memref<4x16x32xf32, #tpu.memory_space<vmem>>, %arg8: memref<1x8x32xf32, #tpu.memory_space<vmem>>) attributes {dimension_semantics = [#tpu.dimension_semantics<parallel>], iteration_bounds = array<i64: 2>, scalar_prefetch = 0 : i64, scratch_operands = 0 : i64, tpu.core_type = #tpu.core_type<tc>, window_params = [{transform_indices = @transform_0, window_bounds = array<i64: 1, 8, 32>}, {pipeline_mode = #tpu.pipeline_mode<synchronous>, transform_indices = @transform_1, window_bounds = array<i64: 1, 32>}, {pipeline_mode = #tpu.pipeline_mode<synchronous>, transform_indices = @transform_2, window_bounds = array<i64: 1, 32>}, {pipeline_mode = #tpu.pipeline_mode<synchronous>, transform_indices = @transform_3, window_bounds = array<i64: 4, 32, 16>}, {pipeline_mode = #tpu.pipeline_mode<synchronous>, transform_indices = @transform_4, window_bounds = array<i64: 4, 32, 16>}, {pipeline_mode = #tpu.pipeline_mode<synchronous>, transform_indices = @transform_5, window_bounds = array<i64: 4, 32, 16>}, {pipeline_mode = #tpu.pipeline_mode<synchronous>, transform_indices = @transform_6, window_bounds = array<i64: 4, 16, 32>}, {transform_indices = @transform_7, window_bounds = array<i64: 1, 8, 32>}]} {
    %c0 = arith.constant 0 : index
    %c0_0 = arith.constant 0 : index
    %c0_1 = arith.constant 0 : index
    %0 = vector.load %arg1[%c0, %c0_0, %c0_1] : memref<1x8x32xf32, #tpu.memory_space<vmem>>, vector<1x8x32xf32>
    %1 = vector.shape_cast %0 : vector<1x8x32xf32> to vector<8x32xf32>
    %cst = arith.constant dense<0.000000e+00> : vector<8xf32>
    %2 = vector.multi_reduction <add>, %1, %cst [1] : vector<8x32xf32> to vector<8xf32>
    %3 = vector.shape_cast %2 : vector<8xf32> to vector<8x1xf32>
    %cst_2 = arith.constant 3.200000e+01 : f32
    %4 = vector.broadcast %cst_2 : f32 to vector<8x1xf32>
    %5 = arith.divf %3, %4 : vector<8x1xf32>
    %6 = vector.broadcast %5 : vector<8x1xf32> to vector<8x32xf32>
    %7 = arith.subf %1, %6 : vector<8x32xf32>
    %8 = arith.mulf %7, %7 : vector<8x32xf32>
    %cst_3 = arith.constant dense<0.000000e+00> : vector<8xf32>
    %9 = vector.multi_reduction <add>, %8, %cst_3 [1] : vector<8x32xf32> to vector<8xf32>
    %10 = vector.shape_cast %9 : vector<8xf32> to vector<8x1xf32>
    %cst_4 = arith.constant 3.200000e+01 : f32
    %11 = vector.broadcast %cst_4 : f32 to vector<8x1xf32>
    %12 = arith.divf %10, %11 : vector<8x1xf32>
    %cst_5 = arith.constant 9.99999974E-6 : f32
    %13 = vector.broadcast %cst_5 : f32 to vector<8x1xf32>
    %14 = arith.addf %12, %13 : vector<8x1xf32>
    %15 = math.rsqrt %14 : vector<8x1xf32>
    %16 = vector.broadcast %15 : vector<8x1xf32> to vector<8x32xf32>
    %17 = arith.mulf %7, %16 : vector<8x32xf32>
    %c0_6 = arith.constant 0 : index
    %c0_7 = arith.constant 0 : index
    %18 = vector.load %arg2[%c0_6, %c0_7] : memref<1x32xf32, #tpu.memory_space<vmem>>, vector<1x32xf32>
    %19 = vector.broadcast %18 : vector<1x32xf32> to vector<8x32xf32>
    %20 = arith.mulf %17, %19 : vector<8x32xf32>
    %c0_8 = arith.constant 0 : index
    %c0_9 = arith.constant 0 : index
    %21 = vector.load %arg3[%c0_8, %c0_9] : memref<1x32xf32, #tpu.memory_space<vmem>>, vector<1x32xf32>
    %22 = vector.broadcast %21 : vector<1x32xf32> to vector<8x32xf32>
    %23 = arith.addf %20, %22 : vector<8x32xf32>
    %cst_10 = arith.constant 0.000000e+00 : f32
    %24 = vector.broadcast %cst_10 : f32 to vector<8x32xf32>
    %c0_11 = arith.constant 0 : index
    %c0_12 = arith.constant 0 : index
    %c0_13 = arith.constant 0 : index
    %25 = vector.load %arg4[%c0_11, %c0_12, %c0_13] : memref<4x32x16xf32, #tpu.memory_space<vmem>>, vector<1x32x16xf32>
    %26 = vector.shape_cast %25 : vector<1x32x16xf32> to vector<32x16xf32>
    %cst_14 = arith.constant dense<0.000000e+00> : vector<8x16xf32>
    %27 = tpu.matmul %23, %26, %cst_14 {dimension_numbers = #tpu.dot_dimension_numbers<[1], [0], [0], [1], [0, 0, 1, 1], [], []>, precision = #tpu.contract_precision<fp32>} : vector<8x32xf32>, vector<32x16xf32>, vector<8x16xf32> -> vector<8x16xf32>
    %c0_15 = arith.constant 0 : index
    %c0_16 = arith.constant 0 : index
    %c0_17 = arith.constant 0 : index
    %28 = vector.load %arg5[%c0_15, %c0_16, %c0_17] : memref<4x32x16xf32, #tpu.memory_space<vmem>>, vector<1x32x16xf32>
    %29 = vector.shape_cast %28 : vector<1x32x16xf32> to vector<32x16xf32>
    %cst_18 = arith.constant dense<0.000000e+00> : vector<8x16xf32>
    %30 = tpu.matmul %23, %29, %cst_18 {dimension_numbers = #tpu.dot_dimension_numbers<[1], [0], [0], [1], [0, 0, 1, 1], [], []>, precision = #tpu.contract_precision<fp32>} : vector<8x32xf32>, vector<32x16xf32>, vector<8x16xf32> -> vector<8x16xf32>
    %c0_19 = arith.constant 0 : index
    %c0_20 = arith.constant 0 : index
    %c0_21 = arith.constant 0 : index
    %31 = vector.load %arg6[%c0_19, %c0_20, %c0_21] : memref<4x32x16xf32, #tpu.memory_space<vmem>>, vector<1x32x16xf32>
    %32 = vector.shape_cast %31 : vector<1x32x16xf32> to vector<32x16xf32>
    %cst_22 = arith.constant dense<0.000000e+00> : vector<8x16xf32>
    %33 = tpu.matmul %23, %32, %cst_22 {dimension_numbers = #tpu.dot_dimension_numbers<[1], [0], [0], [1], [0, 0, 1, 1], [], []>, precision = #tpu.contract_precision<fp32>} : vector<8x32xf32>, vector<32x16xf32>, vector<8x16xf32> -> vector<8x16xf32>
    %cst_23 = arith.constant dense<0.000000e+00> : vector<8x8xf32>
    %34 = tpu.matmul %27, %30, %cst_23 {dimension_numbers = #tpu.dot_dimension_numbers<[1], [1], [0], [0], [0, 0, 1, 0], [], []>, precision = #tpu.contract_precision<fp32>} : vector<8x16xf32>, vector<8x16xf32>, vector<8x8xf32> -> vector<8x8xf32>
    %cst_24 = arith.constant 2.500000e-01 : f32
    %35 = vector.broadcast %cst_24 : f32 to vector<8x8xf32>
    %36 = arith.mulf %34, %35 : vector<8x8xf32>
    %cst_25 = arith.constant dense<0xFF800000> : vector<8xf32>
    %37 = vector.multi_reduction <maximumf>, %36, %cst_25 [1] : vector<8x8xf32> to vector<8xf32>
    %38 = vector.shape_cast %37 : vector<8xf32> to vector<8x1xf32>
    %39 = vector.broadcast %38 : vector<8x1xf32> to vector<8x8xf32>
    %40 = arith.subf %36, %39 : vector<8x8xf32>
    %41 = math.exp %40 : vector<8x8xf32>
    %cst_26 = arith.constant dense<0.000000e+00> : vector<8xf32>
    %42 = vector.multi_reduction <add>, %41, %cst_26 [1] : vector<8x8xf32> to vector<8xf32>
    %43 = vector.shape_cast %42 : vector<8xf32> to vector<8x1xf32>
    %cst_27 = arith.constant dense<0.000000e+00> : vector<8x16xf32>
    %44 = tpu.matmul %41, %33, %cst_27 {dimension_numbers = #tpu.dot_dimension_numbers<[1], [0], [0], [1], [0, 0, 1, 1], [], []>, precision = #tpu.contract_precision<fp32>} : vector<8x8xf32>, vector<8x16xf32>, vector<8x16xf32> -> vector<8x16xf32>
    %45 = tpu.reciprocal %43 : vector<8x1xf32> -> vector<8x1xf32>
    %46 = vector.broadcast %45 : vector<8x1xf32> to vector<8x16xf32>
    %47 = arith.mulf %44, %46 : vector<8x16xf32>
    %c0_28 = arith.constant 0 : index
    %c0_29 = arith.constant 0 : index
    %c0_30 = arith.constant 0 : index
    %48 = vector.load %arg7[%c0_28, %c0_29, %c0_30] : memref<4x16x32xf32, #tpu.memory_space<vmem>>, vector<1x16x32xf32>
    %49 = vector.shape_cast %48 : vector<1x16x32xf32> to vector<16x32xf32>
    %cst_31 = arith.constant dense<0.000000e+00> : vector<8x32xf32>
    %50 = tpu.matmul %47, %49, %cst_31 {dimension_numbers = #tpu.dot_dimension_numbers<[1], [0], [0], [1], [0, 0, 1, 1], [], []>, precision = #tpu.contract_precision<fp32>} : vector<8x16xf32>, vector<16x32xf32>, vector<8x32xf32> -> vector<8x32xf32>
    %51 = arith.addf %24, %50 : vector<8x32xf32>
    %c1 = arith.constant 1 : index
    %c0_32 = arith.constant 0 : index
    %c0_33 = arith.constant 0 : index
    %52 = vector.load %arg4[%c1, %c0_32, %c0_33] : memref<4x32x16xf32, #tpu.memory_space<vmem>>, vector<1x32x16xf32>
    %53 = vector.shape_cast %52 : vector<1x32x16xf32> to vector<32x16xf32>
    %cst_34 = arith.constant dense<0.000000e+00> : vector<8x16xf32>
    %54 = tpu.matmul %23, %53, %cst_34 {dimension_numbers = #tpu.dot_dimension_numbers<[1], [0], [0], [1], [0, 0, 1, 1], [], []>, precision = #tpu.contract_precision<fp32>} : vector<8x32xf32>, vector<32x16xf32>, vector<8x16xf32> -> vector<8x16xf32>
    %c1_35 = arith.constant 1 : index
    %c0_36 = arith.constant 0 : index
    %c0_37 = arith.constant 0 : index
    %55 = vector.load %arg5[%c1_35, %c0_36, %c0_37] : memref<4x32x16xf32, #tpu.memory_space<vmem>>, vector<1x32x16xf32>
    %56 = vector.shape_cast %55 : vector<1x32x16xf32> to vector<32x16xf32>
    %cst_38 = arith.constant dense<0.000000e+00> : vector<8x16xf32>
    %57 = tpu.matmul %23, %56, %cst_38 {dimension_numbers = #tpu.dot_dimension_numbers<[1], [0], [0], [1], [0, 0, 1, 1], [], []>, precision = #tpu.contract_precision<fp32>} : vector<8x32xf32>, vector<32x16xf32>, vector<8x16xf32> -> vector<8x16xf32>
    %c1_39 = arith.constant 1 : index
    %c0_40 = arith.constant 0 : index
    %c0_41 = arith.constant 0 : index
    %58 = vector.load %arg6[%c1_39, %c0_40, %c0_41] : memref<4x32x16xf32, #tpu.memory_space<vmem>>, vector<1x32x16xf32>
    %59 = vector.shape_cast %58 : vector<1x32x16xf32> to vector<32x16xf32>
    %cst_42 = arith.constant dense<0.000000e+00> : vector<8x16xf32>
    %60 = tpu.matmul %23, %59, %cst_42 {dimension_numbers = #tpu.dot_dimension_numbers<[1], [0], [0], [1], [0, 0, 1, 1], [], []>, precision = #tpu.contract_precision<fp32>} : vector<8x32xf32>, vector<32x16xf32>, vector<8x16xf32> -> vector<8x16xf32>
    %cst_43 = arith.constant dense<0.000000e+00> : vector<8x8xf32>
    %61 = tpu.matmul %54, %57, %cst_43 {dimension_numbers = #tpu.dot_dimension_numbers<[1], [1], [0], [0], [0, 0, 1, 0], [], []>, precision = #tpu.contract_precision<fp32>} : vector<8x16xf32>, vector<8x16xf32>, vector<8x8xf32> -> vector<8x8xf32>
    %cst_44 = arith.constant 2.500000e-01 : f32
    %62 = vector.broadcast %cst_44 : f32 to vector<8x8xf32>
    %63 = arith.mulf %61, %62 : vector<8x8xf32>
    %cst_45 = arith.constant dense<0xFF800000> : vector<8xf32>
    %64 = vector.multi_reduction <maximumf>, %63, %cst_45 [1] : vector<8x8xf32> to vector<8xf32>
    %65 = vector.shape_cast %64 : vector<8xf32> to vector<8x1xf32>
    %66 = vector.broadcast %65 : vector<8x1xf32> to vector<8x8xf32>
    %67 = arith.subf %63, %66 : vector<8x8xf32>
    %68 = math.exp %67 : vector<8x8xf32>
    %cst_46 = arith.constant dense<0.000000e+00> : vector<8xf32>
    %69 = vector.multi_reduction <add>, %68, %cst_46 [1] : vector<8x8xf32> to vector<8xf32>
    %70 = vector.shape_cast %69 : vector<8xf32> to vector<8x1xf32>
    %cst_47 = arith.constant dense<0.000000e+00> : vector<8x16xf32>
    %71 = tpu.matmul %68, %60, %cst_47 {dimension_numbers = #tpu.dot_dimension_numbers<[1], [0], [0], [1], [0, 0, 1, 1], [], []>, precision = #tpu.contract_precision<fp32>} : vector<8x8xf32>, vector<8x16xf32>, vector<8x16xf32> -> vector<8x16xf32>
    %72 = tpu.reciprocal %70 : vector<8x1xf32> -> vector<8x1xf32>
    %73 = vector.broadcast %72 : vector<8x1xf32> to vector<8x16xf32>
    %74 = arith.mulf %71, %73 : vector<8x16xf32>
    %c1_48 = arith.constant 1 : index
    %c0_49 = arith.constant 0 : index
    %c0_50 = arith.constant 0 : index
    %75 = vector.load %arg7[%c1_48, %c0_49, %c0_50] : memref<4x16x32xf32, #tpu.memory_space<vmem>>, vector<1x16x32xf32>
    %76 = vector.shape_cast %75 : vector<1x16x32xf32> to vector<16x32xf32>
    %cst_51 = arith.constant dense<0.000000e+00> : vector<8x32xf32>
    %77 = tpu.matmul %74, %76, %cst_51 {dimension_numbers = #tpu.dot_dimension_numbers<[1], [0], [0], [1], [0, 0, 1, 1], [], []>, precision = #tpu.contract_precision<fp32>} : vector<8x16xf32>, vector<16x32xf32>, vector<8x32xf32> -> vector<8x32xf32>
    %78 = arith.addf %51, %77 : vector<8x32xf32>
    %c2 = arith.constant 2 : index
    %c0_52 = arith.constant 0 : index
    %c0_53 = arith.constant 0 : index
    %79 = vector.load %arg4[%c2, %c0_52, %c0_53] : memref<4x32x16xf32, #tpu.memory_space<vmem>>, vector<1x32x16xf32>
    %80 = vector.shape_cast %79 : vector<1x32x16xf32> to vector<32x16xf32>
    %cst_54 = arith.constant dense<0.000000e+00> : vector<8x16xf32>
    %81 = tpu.matmul %23, %80, %cst_54 {dimension_numbers = #tpu.dot_dimension_numbers<[1], [0], [0], [1], [0, 0, 1, 1], [], []>, precision = #tpu.contract_precision<fp32>} : vector<8x32xf32>, vector<32x16xf32>, vector<8x16xf32> -> vector<8x16xf32>
    %c2_55 = arith.constant 2 : index
    %c0_56 = arith.constant 0 : index
    %c0_57 = arith.constant 0 : index
    %82 = vector.load %arg5[%c2_55, %c0_56, %c0_57] : memref<4x32x16xf32, #tpu.memory_space<vmem>>, vector<1x32x16xf32>
    %83 = vector.shape_cast %82 : vector<1x32x16xf32> to vector<32x16xf32>
    %cst_58 = arith.constant dense<0.000000e+00> : vector<8x16xf32>
    %84 = tpu.matmul %23, %83, %cst_58 {dimension_numbers = #tpu.dot_dimension_numbers<[1], [0], [0], [1], [0, 0, 1, 1], [], []>, precision = #tpu.contract_precision<fp32>} : vector<8x32xf32>, vector<32x16xf32>, vector<8x16xf32> -> vector<8x16xf32>
    %c2_59 = arith.constant 2 : index
    %c0_60 = arith.constant 0 : index
    %c0_61 = arith.constant 0 : index
    %85 = vector.load %arg6[%c2_59, %c0_60, %c0_61] : memref<4x32x16xf32, #tpu.memory_space<vmem>>, vector<1x32x16xf32>
    %86 = vector.shape_cast %85 : vector<1x32x16xf32> to vector<32x16xf32>
    %cst_62 = arith.constant dense<0.000000e+00> : vector<8x16xf32>
    %87 = tpu.matmul %23, %86, %cst_62 {dimension_numbers = #tpu.dot_dimension_numbers<[1], [0], [0], [1], [0, 0, 1, 1], [], []>, precision = #tpu.contract_precision<fp32>} : vector<8x32xf32>, vector<32x16xf32>, vector<8x16xf32> -> vector<8x16xf32>
    %cst_63 = arith.constant dense<0.000000e+00> : vector<8x8xf32>
    %88 = tpu.matmul %81, %84, %cst_63 {dimension_numbers = #tpu.dot_dimension_numbers<[1], [1], [0], [0], [0, 0, 1, 0], [], []>, precision = #tpu.contract_precision<fp32>} : vector<8x16xf32>, vector<8x16xf32>, vector<8x8xf32> -> vector<8x8xf32>
    %cst_64 = arith.constant 2.500000e-01 : f32
    %89 = vector.broadcast %cst_64 : f32 to vector<8x8xf32>
    %90 = arith.mulf %88, %89 : vector<8x8xf32>
    %cst_65 = arith.constant dense<0xFF800000> : vector<8xf32>
    %91 = vector.multi_reduction <maximumf>, %90, %cst_65 [1] : vector<8x8xf32> to vector<8xf32>
    %92 = vector.shape_cast %91 : vector<8xf32> to vector<8x1xf32>
    %93 = vector.broadcast %92 : vector<8x1xf32> to vector<8x8xf32>
    %94 = arith.subf %90, %93 : vector<8x8xf32>
    %95 = math.exp %94 : vector<8x8xf32>
    %cst_66 = arith.constant dense<0.000000e+00> : vector<8xf32>
    %96 = vector.multi_reduction <add>, %95, %cst_66 [1] : vector<8x8xf32> to vector<8xf32>
    %97 = vector.shape_cast %96 : vector<8xf32> to vector<8x1xf32>
    %cst_67 = arith.constant dense<0.000000e+00> : vector<8x16xf32>
    %98 = tpu.matmul %95, %87, %cst_67 {dimension_numbers = #tpu.dot_dimension_numbers<[1], [0], [0], [1], [0, 0, 1, 1], [], []>, precision = #tpu.contract_precision<fp32>} : vector<8x8xf32>, vector<8x16xf32>, vector<8x16xf32> -> vector<8x16xf32>
    %99 = tpu.reciprocal %97 : vector<8x1xf32> -> vector<8x1xf32>
    %100 = vector.broadcast %99 : vector<8x1xf32> to vector<8x16xf32>
    %101 = arith.mulf %98, %100 : vector<8x16xf32>
    %c2_68 = arith.constant 2 : index
    %c0_69 = arith.constant 0 : index
    %c0_70 = arith.constant 0 : index
    %102 = vector.load %arg7[%c2_68, %c0_69, %c0_70] : memref<4x16x32xf32, #tpu.memory_space<vmem>>, vector<1x16x32xf32>
    %103 = vector.shape_cast %102 : vector<1x16x32xf32> to vector<16x32xf32>
    %cst_71 = arith.constant dense<0.000000e+00> : vector<8x32xf32>
    %104 = tpu.matmul %101, %103, %cst_71 {dimension_numbers = #tpu.dot_dimension_numbers<[1], [0], [0], [1], [0, 0, 1, 1], [], []>, precision = #tpu.contract_precision<fp32>} : vector<8x16xf32>, vector<16x32xf32>, vector<8x32xf32> -> vector<8x32xf32>
    %105 = arith.addf %78, %104 : vector<8x32xf32>
    %c3 = arith.constant 3 : index
    %c0_72 = arith.constant 0 : index
    %c0_73 = arith.constant 0 : index
    %106 = vector.load %arg4[%c3, %c0_72, %c0_73] : memref<4x32x16xf32, #tpu.memory_space<vmem>>, vector<1x32x16xf32>
    %107 = vector.shape_cast %106 : vector<1x32x16xf32> to vector<32x16xf32>
    %cst_74 = arith.constant dense<0.000000e+00> : vector<8x16xf32>
    %108 = tpu.matmul %23, %107, %cst_74 {dimension_numbers = #tpu.dot_dimension_numbers<[1], [0], [0], [1], [0, 0, 1, 1], [], []>, precision = #tpu.contract_precision<fp32>} : vector<8x32xf32>, vector<32x16xf32>, vector<8x16xf32> -> vector<8x16xf32>
    %c3_75 = arith.constant 3 : index
    %c0_76 = arith.constant 0 : index
    %c0_77 = arith.constant 0 : index
    %109 = vector.load %arg5[%c3_75, %c0_76, %c0_77] : memref<4x32x16xf32, #tpu.memory_space<vmem>>, vector<1x32x16xf32>
    %110 = vector.shape_cast %109 : vector<1x32x16xf32> to vector<32x16xf32>
    %cst_78 = arith.constant dense<0.000000e+00> : vector<8x16xf32>
    %111 = tpu.matmul %23, %110, %cst_78 {dimension_numbers = #tpu.dot_dimension_numbers<[1], [0], [0], [1], [0, 0, 1, 1], [], []>, precision = #tpu.contract_precision<fp32>} : vector<8x32xf32>, vector<32x16xf32>, vector<8x16xf32> -> vector<8x16xf32>
    %c3_79 = arith.constant 3 : index
    %c0_80 = arith.constant 0 : index
    %c0_81 = arith.constant 0 : index
    %112 = vector.load %arg6[%c3_79, %c0_80, %c0_81] : memref<4x32x16xf32, #tpu.memory_space<vmem>>, vector<1x32x16xf32>
    %113 = vector.shape_cast %112 : vector<1x32x16xf32> to vector<32x16xf32>
    %cst_82 = arith.constant dense<0.000000e+00> : vector<8x16xf32>
    %114 = tpu.matmul %23, %113, %cst_82 {dimension_numbers = #tpu.dot_dimension_numbers<[1], [0], [0], [1], [0, 0, 1, 1], [], []>, precision = #tpu.contract_precision<fp32>} : vector<8x32xf32>, vector<32x16xf32>, vector<8x16xf32> -> vector<8x16xf32>
    %cst_83 = arith.constant dense<0.000000e+00> : vector<8x8xf32>
    %115 = tpu.matmul %108, %111, %cst_83 {dimension_numbers = #tpu.dot_dimension_numbers<[1], [1], [0], [0], [0, 0, 1, 0], [], []>, precision = #tpu.contract_precision<fp32>} : vector<8x16xf32>, vector<8x16xf32>, vector<8x8xf32> -> vector<8x8xf32>
    %cst_84 = arith.constant 2.500000e-01 : f32
    %116 = vector.broadcast %cst_84 : f32 to vector<8x8xf32>
    %117 = arith.mulf %115, %116 : vector<8x8xf32>
    %cst_85 = arith.constant dense<0xFF800000> : vector<8xf32>
    %118 = vector.multi_reduction <maximumf>, %117, %cst_85 [1] : vector<8x8xf32> to vector<8xf32>
    %119 = vector.shape_cast %118 : vector<8xf32> to vector<8x1xf32>
    %120 = vector.broadcast %119 : vector<8x1xf32> to vector<8x8xf32>
    %121 = arith.subf %117, %120 : vector<8x8xf32>
    %122 = math.exp %121 : vector<8x8xf32>
    %cst_86 = arith.constant dense<0.000000e+00> : vector<8xf32>
    %123 = vector.multi_reduction <add>, %122, %cst_86 [1] : vector<8x8xf32> to vector<8xf32>
    %124 = vector.shape_cast %123 : vector<8xf32> to vector<8x1xf32>
    %cst_87 = arith.constant dense<0.000000e+00> : vector<8x16xf32>
    %125 = tpu.matmul %122, %114, %cst_87 {dimension_numbers = #tpu.dot_dimension_numbers<[1], [0], [0], [1], [0, 0, 1, 1], [], []>, precision = #tpu.contract_precision<fp32>} : vector<8x8xf32>, vector<8x16xf32>, vector<8x16xf32> -> vector<8x16xf32>
    %126 = tpu.reciprocal %124 : vector<8x1xf32> -> vector<8x1xf32>
    %127 = vector.broadcast %126 : vector<8x1xf32> to vector<8x16xf32>
    %128 = arith.mulf %125, %127 : vector<8x16xf32>
    %c3_88 = arith.constant 3 : index
    %c0_89 = arith.constant 0 : index
    %c0_90 = arith.constant 0 : index
    %129 = vector.load %arg7[%c3_88, %c0_89, %c0_90] : memref<4x16x32xf32, #tpu.memory_space<vmem>>, vector<1x16x32xf32>
    %130 = vector.shape_cast %129 : vector<1x16x32xf32> to vector<16x32xf32>
    %cst_91 = arith.constant dense<0.000000e+00> : vector<8x32xf32>
    %131 = tpu.matmul %128, %130, %cst_91 {dimension_numbers = #tpu.dot_dimension_numbers<[1], [0], [0], [1], [0, 0, 1, 1], [], []>, precision = #tpu.contract_precision<fp32>} : vector<8x16xf32>, vector<16x32xf32>, vector<8x32xf32> -> vector<8x32xf32>
    %132 = arith.addf %105, %131 : vector<8x32xf32>
    %c0_92 = arith.constant 0 : index
    %c0_93 = arith.constant 0 : index
    %c0_94 = arith.constant 0 : index
    %133 = vector.load %arg8[%c0_92, %c0_93, %c0_94] : memref<1x8x32xf32, #tpu.memory_space<vmem>>, vector<1x8x32xf32>
    %134 = vector.shape_cast %133 : vector<1x8x32xf32> to vector<8x32xf32>
    %135 = vector.shape_cast %132 : vector<8x32xf32> to vector<1x8x32xf32>
    tpu.vector_store %arg8[%c0_92, %c0_93, %c0_94], %135 {strides = array<i32>} : memref<1x8x32xf32, #tpu.memory_space<vmem>>, vector<1x8x32xf32>,
    return
  }
  func.func @transform_0(%arg0: i32) -> (i32, i32, i32) {
    %c0_i32 = arith.constant 0 : i32
    %c0_i32_0 = arith.constant 0 : i32
    %c0_i32_1 = arith.constant 0 : i32
    return %arg0, %c0_i32, %c0_i32_0 : i32, i32, i32
  }
  func.func @transform_1(%arg0: i32) -> (i32, i32) {
    %c0_i32 = arith.constant 0 : i32
    %c0_i32_0 = arith.constant 0 : i32
    %c0_i32_1 = arith.constant 0 : i32
    return %c0_i32, %c0_i32_0 : i32, i32
  }
  func.func @transform_2(%arg0: i32) -> (i32, i32) {
    %c0_i32 = arith.constant 0 : i32
    %c0_i32_0 = arith.constant 0 : i32
    %c0_i32_1 = arith.constant 0 : i32
    return %c0_i32, %c0_i32_0 : i32, i32
  }
  func.func @transform_3(%arg0: i32) -> (i32, i32, i32) {
    %c0_i32 = arith.constant 0 : i32
    %c0_i32_0 = arith.constant 0 : i32
    %c0_i32_1 = arith.constant 0 : i32
    %c0_i32_2 = arith.constant 0 : i32
    return %c0_i32, %c0_i32_0, %c0_i32_1 : i32, i32, i32
  }
  func.func @transform_4(%arg0: i32) -> (i32, i32, i32) {
    %c0_i32 = arith.constant 0 : i32
    %c0_i32_0 = arith.constant 0 : i32
    %c0_i32_1 = arith.constant 0 : i32
    %c0_i32_2 = arith.constant 0 : i32
    return %c0_i32, %c0_i32_0, %c0_i32_1 : i32, i32, i32
  }
  func.func @transform_5(%arg0: i32) -> (i32, i32, i32) {
    %c0_i32 = arith.constant 0 : i32
    %c0_i32_0 = arith.constant 0 : i32
    %c0_i32_1 = arith.constant 0 : i32
    %c0_i32_2 = arith.constant 0 : i32
    return %c0_i32, %c0_i32_0, %c0_i32_1 : i32, i32, i32
  }
  func.func @transform_6(%arg0: i32) -> (i32, i32, i32) {
    %c0_i32 = arith.constant 0 : i32
    %c0_i32_0 = arith.constant 0 : i32
    %c0_i32_1 = arith.constant 0 : i32
    %c0_i32_2 = arith.constant 0 : i32
    return %c0_i32, %c0_i32_0, %c0_i32_1 : i32, i32, i32
  }
  func.func @transform_7(%arg0: i32) -> (i32, i32, i32) {
    %c0_i32 = arith.constant 0 : i32
    %c0_i32_0 = arith.constant 0 : i32
    %c0_i32_1 = arith.constant 0 : i32
    return %arg0, %c0_i32, %c0_i32_0 : i32, i32, i32
  }
}

</mosaic_0001>

<bundles_post_ra>
// kernel: tpu_custom_call.1
= control target key start
LH: loop header
LB: loop body
LE: loop exit
PB: predicated region body
PF: predicated region fallthrough
CT: control target
= control target key end

     0   :  { %12 = vsyncpa [#allocation3], 0  ;;  %s15550_s0 = inlined_call_operand.vmem [shape: f32[2,8,32], index: 0, kind: input, shape index: {}]   ;;  %s15551_s1 = inlined_call_operand.vmem [shape: f32[1,32], index: 1, kind: input, shape index: {}]   ;;  %s15552_s2 = inlined_call_operand.vmem [shape: f32[1,32], index: 2, kind: input, shape index: {}]   ;;  %s15553_s3 = inlined_call_operand.vmem [shape: f32[4,32,16], index: 3, kind: input, shape index: {}]   ;;  %s15554_s4 = inlined_call_operand.vmem [shape: f32[4,32,16], index: 4, kind: input, shape index: {}]   ;;  %s15555_s5 = inlined_call_operand.vmem [shape: f32[4,32,16], index: 5, kind: input, shape index: {}]   ;;  %s15556_s6 = inlined_call_operand.vmem [shape: f32[4,16,32], index: 6, kind: input, shape index: {}]   ;;  %s15557_s7 = inlined_call_operand.hbm [shape: f32[2,8,32], index: 7, kind: output, shape index: {}]  }
   0x1   :  { %14 = vsyncpa [#allocation3 + $0x1], 0  ;;  %s14474_s24 = smov 0   ;;  %s14476_s25 = smov 0  }
   0x2   :  { %s14478_s26 = smov 0   ;;  %s14480_s27 = smov 0  }
   0x3 LB: > { %s14495_s28 = sadd.s32 4294967295, %s14428_s27   ;;  %s11775_s29 = sadd.s32 4294967294, %s14428_s27   ;;  %s14428_s27 = sphi %s14480_s27, %s15563_s27   ;;  %s14424_s26 = sphi %s14478_s26, %s15562_s26   ;;  %s14420_s25 = sphi %s14476_s25, %s15561_s25   ;;  %s14416_s24 = sphi %s14474_s24, %s15560_s24  }
   0x4   : > { %s14499_s30 = sadd.s32 1, %s14428_s27   ;;  %s179_s8 = sadd.s32 1, %s14424_s26 }
   0x5   : > { %s176_s9 = ssub.s32 %s14428_s27, %s14499_s30  ;;  %p189_p0 = scmp.ne.s32.totalorder %s14424_s26, %s14420_s25 }
   0x6   : > { %p177_p1 = scmp.eq.s32.totalorder %s176_s9, 0  ;;  %p190_p2 = scmp.eq.s32.totalorder %s14495_s28, 1 }
   0x7   : > { %p195_p3 = scmp.ne.s32.totalorder %s14420_s25, %s14416_s24  ;;  %p196_p4 = scmp.eq.s32.totalorder %s11775_s29, 1 }
   0x8   : > { %s14510_s10 = scalar_select %p177_p1, %s14424_s26, %s179_s8  }
   0x9   : > { %p14512_p5 = por %p190_p2, %p189_p0  ;;  %p14516_p6 = por %p196_p4, %p195_p3 }
   0xa   : > { %p11778_p7 = scmp.ge.s32.totalorder %s14428_s27, 1  ;;  %p239_p8 = scmp.lt.s32.totalorder %s14428_s27, 3 }
   0xc   : > { %p240_p9 = pnand %p11778_p7, %p239_p8 }
   0xd   : > { %p270_p10 = scmp.lt.s32.totalorder (!%p240_p9), %s14495_s28, 1  ;;  %vm275_vm0 = vcmask (!%p240_p9), 261120   ;;  %v306_v7 = vld [vmem:[%s15553_s3] sm:$0xff] (!%p240_p9)  ;;  %v307_v8 = vld [vmem:[%s15553_s3 + $0x8] sm:$0xff] (!%p240_p9)  ;;  %v14430_v12 = vmov (!%p240_p9), 0.0|0.0   ;;  %v308_v13 = vld [vmem:[%s15553_s3 + $0x10] sm:$0xff] (!%p240_p9) }
   0xe   : > { %243 = sbr.rel (%p240_p9) target bundleno = 4351 (0x10ff), region = 48  ;;  %v314_v9 = vand.u32 (!%p240_p9), 4294901760, %v306_v7  ;;  %v317_v10 = vand.u32 (!%p240_p9), 4294901760, %v307_v8  ;;  %13575 = vmatprep.subr.bf16.mxu0 (!%p240_p9), %v14430_v12  ;;  %13557 = vmatprep.subr.bf16.mxu1 (!%p240_p9), %v14430_v12  ;;  %v309_v14 = vld [vmem:[%s15553_s3 + $0x18] sm:$0xff] (!%p240_p9)  ;;  %v320_v15 = vand.u32 (!%p240_p9), 4294901760, %v308_v13  ;;  %vm14431_vm1 = vmmov (!%p240_p9), 0  }
   0xf   : > { %v323_v16 = vand.u32 (!%p240_p9), 4294901760, %v309_v14  ;;  %v14432_v22 = vmov (!%p240_p9), 0.0   ;;  %v11781_v45 = vld [vmem:[%s15551_s1] ss:$0 sm:$0xff] (!%p240_p9)  ;;  %v1288_v54 = vld [vmem:[%s15555_s5 + $0x8] sm:$0xff] (!%p240_p9)  ;;  %v1289_v62 = vld [vmem:[%s15555_s5 + $0x10] sm:$0xff] (!%p240_p9) }
  0x10   : > { %v14535_v11 = vpack.c.bf16 (!%p240_p9), %v317_v10, %v314_v9  ;;  %v14549_v17 = vsub.f32 (!%p240_p9), %v306_v7, %v314_v9  ;;  %v14551_v18 = vsub.f32 (!%p240_p9), %v307_v8, %v317_v10  ;;  %v14555_v20 = vsub.f32 (!%p240_p9), %v308_v13, %v320_v15  ;;  %12398 = vmatprep.mubr.msk.f32.mxu0 (!%p240_p9), %vm14431_vm1, %v14432_v22  ;;  %v11782_v47 = vld [vmem:[%s15552_s2] ss:$0 sm:$0xff] (!%p240_p9)  ;;  %v799_v60 = vld [vmem:[%s15554_s4 + $0x8] sm:$0xff] (!%p240_p9)  ;;  %v1290_v63 = vld [vmem:[%s15555_s5 + $0x18] sm:$0xff] (!%p240_p9)  ;;  %s267_s22 = sand.u32 (!%p240_p9), 1, %s14420_s25   ;;  %s11826_s29 = sshll.u32 (!%p240_p9), %s14495_s28, 7 }
  0x11   : > { %v14553_v19 = vpack.c.bf16 (!%p240_p9), %v323_v16, %v320_v15  ;;  %v14557_v21 = vsub.f32 (!%p240_p9), %v309_v14, %v323_v16  ;;  %12365 = vmatprep.mubr.msk.f32.mxu1 (!%p240_p9), %vm14431_vm1, %v14432_v22  ;;  %v1287_v53 = vld [vmem:[%s15555_s5] sm:$0xff] (!%p240_p9)  ;;  %v1295_v58 = vand.u32 (!%p240_p9), 4294901760, %v1288_v54  ;;  %v801_v7 = vld [vmem:[%s15554_s4 + $0x18] sm:$0xff] (!%p240_p9)  ;;  %vm1776_vm2 = vcmask (!%p240_p9), 130048   ;;  %s11779_s23 = sshll.u32 (!%p240_p9), %s267_s22, 3  ;;  %s15507_s15 = scalar_lea.hbm (!%p240_p9), %s15557_s7, %s11826_s29 }
  0x12   : > { %13577 = vmatpush3.bf16.msra.mxu0 (!%p240_p9), %v14535_v11  ;;  %13559 = vmatpush3.bf16.msra.mxu1 (!%p240_p9), %v14535_v11  ;;  %v395_v23 = vand.u32 (!%p240_p9), 4294901760, %v14549_v17  ;;  %v402_v24 = vand.u32 (!%p240_p9), 4294901760, %v14551_v18  ;;  %v409_v30 = vand.u32 (!%p240_p9), 4294901760, %v14555_v20  ;;  %v13570_v39 = vpack.c.bf16 (!%p240_p9), %v14551_v18, %v14549_v17  ;;  %v798_v59 = vld [vmem:[%s15554_s4] sm:$0xff] (!%p240_p9)  ;;  %s269_s8 = scalar_lea.vmem (!%p240_p9), [#allocation2], %s11779_s23  ;;  %s11703_s16 = scalar_lea.sflag (!%p240_p9), [#allocation3], %s267_s22 }
  0x13   : > { %13578 = vmatprep.subr.bf16.mxu0 (!%p240_p9), %v14430_v12  ;;  %13560 = vmatprep.subr.bf16.mxu1 (!%p240_p9), %v14430_v12  ;;  %v416_v31 = vand.u32 (!%p240_p9), 4294901760, %v14557_v21  ;;  %v13573_v40 = vpack.c.bf16 (!%p240_p9), %v14557_v21, %v14555_v20  ;;  %v1292_v57 = vand.u32 (!%p240_p9), 4294901760, %v1287_v53  ;;  %vm2230_vm3 = vcmask (!%p240_p9), 64512   ;;  %s11716_s9 = sshll.u32 (!%p240_p9), %s269_s8, 4  ;;  %s15509_s9 = int_to_ptr.vmem [resolvable:$true] %s11716_s9 }
  0x14   : > { %v13582_v25 = vpack.c.bf16 (!%p240_p9), %v402_v24, %v395_v23  ;;  %v396_v26 = vsub.f32 (!%p240_p9), %v14549_v17, %v395_v23  ;;  %v403_v27 = vsub.f32 (!%p240_p9), %v14551_v18, %v402_v24  ;;  %v410_v34 = vsub.f32 (!%p240_p9), %v14555_v20, %v409_v30 }
  0x15   : > { %s271_s13 = scalar_select %p270_p10, %s14495_s28, 1  ;;  %v13585_v33 = vpack.c.bf16 %v416_v31, %v409_v30  ;;  %v417_v35 = vsub.f32 %v14557_v21, %v416_v31  ;;  %v812_v23 = vand.u32 4294901760, %v801_v7  ;;  %v14651_v24 = vpack.c.bf16 %v1295_v58, %v1292_v57 }
  0x16   : > { %13580 = vmatpush3.bf16.msra.mxu0 %v14553_v19  ;;  %13562 = vmatpush3.bf16.msra.mxu1 %v14553_v19  ;;  %v397_v28 = vand.u32 4294901760, %v396_v26  ;;  %v404_v29 = vand.u32 4294901760, %v403_v27  ;;  %v411_v36 = vand.u32 4294901760, %v410_v34  ;;  %s14433_s28 = smov [#allocation2]  }
  0x17   : > { %s11780_s14 = sshll.u32 %s271_s13, 3  ;;  %13581 = vmatprep.subr.bf16.mxu0 %v14430_v12  ;;  %13563 = vmatprep.subr.bf16.mxu1 %v14430_v12  ;;  %v418_v37 = vand.u32 4294901760, %v417_v35  ;;  %s14370_s18 = sshll.u32 %s14433_s28, 4  ;;  %s14371_s18 = int_to_ptr.vmem [resolvable:$false] %s14370_s18 }
  0x18   : > { %s273_s17 = scalar_lea.vmem %s15550_s0, %s11780_s14  ;;  %v13564_v32 = vpack.c.bf16 %v404_v29, %v397_v28  ;;  %v14668_v29 = vsub.f32 %v801_v7, %v812_v23  ;;  %s14372_s19 = scalar_lea.vmem %s14371_s18, 256 }
  0x19   : > { %v274_v0 = vld [vmem:[%s273_s17] sm:$0xff]  ;;  %v13567_v38 = vpack.c.bf16 %v418_v37, %v411_v36  ;;  %s14366_s17 = scalar_lea.vmem %s15509_s9, 128  ;;  %p14373_p0 = scmp.lt.s32.totalorder %s15509_s9, %s14371_s18 }
  0x1a   : > { %v276_v1 = vsel %vm275_vm0, %v274_v0, 0.0  ;;  %p14367_p11 = scmp.ne.s32.totalorder %s15509_s9, %s14366_s17  ;;  %p14374_p1 = scmp.lt.s32.totalorder %s14372_s19, %s14366_s17 }
  0x1b   : > { %277 = vadd.xlane.f32.xlu0 %v276_v1  ;;  %v14623_v1 = vsub.f32 %v1288_v54, %v1295_v58  ;;  %v11783_v58 = vld [vmem:[%s15553_s3 + $0x20] sm:$0xff] }
  0x1c   : > { %p14368_p12 = pnand %p14367_p11, %p14512_p5  ;;  %p14375_p2 = por %p14374_p1, %p14373_p0 }
  0x1d   : > { %v1380_v13 = vand.u32 4294901760, %v14623_v1 }
  0x1e   : > { %p14369_p13 = pneg %p14368_p12 }
  0x20   : > { %p14376_p3 = pnand %p14375_p2, %p14369_p13 }
  0xa8   : > { %v278_v2 = vpop.xlane.xlu0 %277 }
  0xa9   : > { %v280_v3 = vmul.f32 0.03125, %v278_v2  ;;  %v803_v2 = vand.u32 4294901760, %v798_v59 }
  0xab   : > { %v281_v4 = vsub.f32 %v274_v0, %v280_v3  ;;  %v14621_v0 = vsub.f32 %v1287_v53, %v1292_v57  ;;  %v806_v3 = vand.u32 4294901760, %v799_v60  ;;  %v14636_v8 = vsub.f32 %v798_v59, %v803_v2  ;;  %v11784_v59 = vld [vmem:[%s15553_s3 + $0x28] sm:$0xff] }
  0xad   : > { %v282_v5 = vmul.f32 %v281_v4, %v281_v4  ;;  %v14638_v9 = vsub.f32 %v799_v60, %v806_v3  ;;  %v1373_v10 = vand.u32 4294901760, %v14621_v0  ;;  %v884_v26 = vand.u32 4294901760, %v14636_v8 }
  0xaf   : > { %v283_v6 = vsel %vm275_vm0, %v282_v5, 0.0  ;;  %v1301_v5 = vand.u32 4294901760, %v1290_v63  ;;  %v891_v27 = vand.u32 4294901760, %v14638_v9  ;;  %v13606_v53 = vpack.c.bf16 %v14638_v9, %v14636_v8 }
  0xb0   : > { %284 = vadd.xlane.f32.xlu0 %v283_v6  ;;  %v800_v6 = vld [vmem:[%s15554_s4 + $0x10] sm:$0xff]  ;;  %v13654_v57 = vpack.c.bf16 %v1380_v13, %v1373_v10 }
  0xb1   : > { %v14645_v15 = vsub.f32 %v1290_v63, %v1301_v5  ;;  %v809_v16 = vand.u32 4294901760, %v800_v6  ;;  %v892_v34 = vsub.f32 %v14638_v9, %v891_v27  ;;  %v13618_v60 = vpack.c.bf16 %v891_v27, %v884_v26 }
  0xb2   : > { %v2699_v63 = vand.u32 4294901760, %v11783_v58 }
  0xb3   : > { %v14666_v28 = vsub.f32 %v800_v6, %v809_v16  ;;  %v1394_v31 = vand.u32 4294901760, %v14645_v15  ;;  %v14704_v20 = vpack.c.bf16 %v812_v23, %v809_v16 }
  0xb5   : > { %v1395_v36 = vsub.f32 %v14645_v15, %v1394_v31  ;;  %v898_v37 = vand.u32 4294901760, %v14666_v28 }
 0x13d   : > { %v285_v41 = vpop.xlane.xlu0 %284 }
 0x13e   : > { %v286_v42 = vmul.f32 0.03125, %v285_v41 }
 0x140   : > { %v287_v43 = vadd.f32 1e-05, %v286_v42  ;;  %v1396_v42 = vand.u32 4294901760, %v1395_v36 }
 0x142   : > { %14348 = vrsqrt.f32 %v287_v43  ;;  %v899_v43 = vsub.f32 %v14666_v28, %v898_v37 }
 0x14c   : > { %v14349_v44 = vpop.eup %14348 }
 0x14d   : > { %v289_v46 = vmul.f32 %v14349_v44, %v281_v4  ;;  %v1298_v4 = vand.u32 4294901760, %v1289_v62 }
 0x14f   : > { %v297_v48 = vmul.f32 %v11781_v45, %v289_v46  ;;  %v14643_v14 = vsub.f32 %v1289_v62, %v1298_v4  ;;  %v14678_v17 = vpack.c.bf16 %v1301_v5, %v1298_v4  ;;  %v14795_v4 = vsub.f32 %v11783_v58, %v2699_v63 }
 0x151   : > { %v305_v49 = vadd.f32 %v11782_v47, %v297_v48  ;;  %v1387_v30 = vand.u32 4294901760, %v14643_v14  ;;  %v900_v47 = vand.u32 4294901760, %v899_v43  ;;  %v13645_v54 = vpack.c.bf16 %v14645_v15, %v14643_v14 }
 0x153   : > { %v311_v50 = vsel %vm275_vm0, %v305_v49, 0  ;;  %v1388_v35 = vsub.f32 %v14643_v14, %v1387_v30  ;;  %v13657_v62 = vpack.c.bf16 %v1394_v31, %v1387_v30 }
 0x154   : > { %v14586_v51 = vand.u32 4294901760, %v311_v50 }
 0x155   : > { %v1389_v41 = vand.u32 4294901760, %v1388_v35 }
 0x156   : > { %v14589_v52 = vsub.f32 %v311_v50, %v14586_v51  ;;  %v13642_v50 = vpack.c.bf16 %v14623_v1, %v14621_v0 }
 0x157   : > { %v13639_v46 = vpack.c.bf16 %v1396_v42, %v1389_v41 }
 0x158   : > { %v14598_v55 = vand.u32 4294901760, %v14589_v52 }
 0x15a   : > { %12399 = vmatmul.mubr.f32.vlgmr.msra.gmra.mrb[0].mxu0 %v14598_v55  ;;  %v385_v56 = vsub.f32 %v14589_v52, %v14598_v55 }
 0x15b   : > { %13583 = vmatpush3.bf16.msra.mxu0 %v13582_v25  ;;  %12409 = vmatprep.mubr.msk.f32.mxu0 %vm14431_vm1, %v14432_v22  ;;  %v1381_v25 = vsub.f32 %v14623_v1, %v1380_v13  ;;  %v11785_v1 = vld [vmem:[%s15553_s3 + $0x30] sm:$0xff] }
 0x15c   : > { %13584 = vmatprep.subr.bf16.mxu0 %v14430_v12  ;;  %v14612_v61 = vand.u32 4294901760, %v385_v56  ;;  %v13609_v56 = vpack.c.bf16 %v14668_v29, %v14666_v28  ;;  %v2705_v6 = vand.u32 4294901760, %v11785_v1 }
 0x15e   : > { %12366 = vmatmul.mubr.f32.vlgmr.msra.gmra.mrb[0].mxu1 %v14612_v61 }
 0x15f   : > { %13565 = vmatpush3.bf16.msra.mxu1 %v13564_v32  ;;  %13586 = vmatpush3.bf16.msra.mxu0 %v13585_v33  ;;  %v14676_v32 = vpack.c.bf16 %v806_v3, %v803_v2  ;;  %v885_v33 = vsub.f32 %v14636_v8, %v884_v26  ;;  %v11786_v2 = vld [vmem:[%s15553_s3 + $0x38] sm:$0xff]  ;;  %v14805_v8 = vsub.f32 %v11785_v1, %v2705_v6 }
 0x160   : > { %13566 = vmatprep.subr.bf16.mxu1 %v14430_v12  ;;  %13587 = vmatprep.subr.bf16.mxu0 %v14430_v12  ;;  %v2708_v7 = vand.u32 4294901760, %v11786_v2 }
 0x161   : > { %12376 = vmatprep.mubr.msk.f32.mxu1 %vm14431_vm1, %v14432_v22  ;;  %v2794_v23 = vand.u32 4294901760, %v14805_v8 }
 0x162   : > { %12410 = vmatmul.mubr.f32.vlgmr.msra.gmra.mrb[0].mxu0 %v14586_v51  ;;  %v2800_v9 = vsub.f32 %v11786_v2, %v2708_v7 }
 0x163   : > { %13568 = vmatpush3.bf16.msra.mxu1 %v13567_v38  ;;  %13589 = vmatpush3.bf16.msra.mxu0 %v14535_v11  ;;  %v1374_v11 = vsub.f32 %v14621_v0, %v1373_v10  ;;  %v905_v38 = vand.u32 4294901760, %v14668_v29  ;;  %v2702_v0 = vand.u32 4294901760, %v11784_v59  ;;  %v2780_v10 = vand.u32 4294901760, %v14795_v4 }
 0x164   : > { %13569 = vmatprep.subr.bf16.mxu1 %v14430_v12  ;;  %13590 = vmatprep.subr.bf16.mxu0 %v14430_v12  ;;  %v2795_v27 = vsub.f32 %v14805_v8, %v2794_v23 }
 0x165   : > { %12420 = vmatprep.mubr.msk.f32.mxu0 %vm14431_vm1, %v14432_v22  ;;  %v1375_v18 = vand.u32 4294901760, %v1374_v11  ;;  %v906_v44 = vsub.f32 %v14668_v29, %v905_v38  ;;  %v13621_v3 = vpack.c.bf16 %v905_v38, %v898_v37  ;;  %v14797_v5 = vsub.f32 %v11784_v59, %v2702_v0  ;;  %v11793_v38 = vld [vmem:[%s15555_s5 + $0x30] sm:$0xff] }
 0x166   : > { %12377 = vmatmul.mubr.f32.vlgmr.msra.gmra.mrb[0].mxu1 %v14586_v51  ;;  %v14814_v14 = vpack.c.bf16 %v2702_v0, %v2699_v63  ;;  %v2781_v15 = vsub.f32 %v14795_v4, %v2780_v10  ;;  %v14826_v11 = vpack.c.bf16 %v2708_v7, %v2705_v6  ;;  %v2796_v30 = vand.u32 4294901760, %v2795_v27 }
 0x167   : > { %13571 = vmatpush3.bf16.msra.mxu1 %v13570_v39  ;;  %13592 = vmatpush3.bf16.msra.mxu0 %v14553_v19  ;;  %v1382_v19 = vand.u32 4294901760, %v1381_v25  ;;  %v886_v39 = vand.u32 4294901760, %v885_v33  ;;  %v907_v48 = vand.u32 4294901760, %v906_v44  ;;  %v2787_v13 = vand.u32 4294901760, %v14797_v5  ;;  %v11791_v33 = vld [vmem:[%s15555_s5 + $0x20] sm:$0xff] }
 0x168   : > { %13572 = vmatprep.subr.bf16.mxu1 %v14430_v12  ;;  %13629 = vmatprep.subr.bf16.mxu0 %v14430_v12  ;;  %v2782_v25 = vand.u32 4294901760, %v2781_v15  ;;  %v3679_v36 = vand.u32 4294901760, %v11791_v33 }
 0x169   : > { %12387 = vmatprep.mubr.msk.f32.mxu1 %vm14431_vm1, %v14432_v22  ;;  %v13636_v21 = vpack.c.bf16 %v1382_v19, %v1375_v18  ;;  %v13603_v49 = vpack.c.bf16 %v907_v48, %v900_v47  ;;  %v2788_v16 = vsub.f32 %v14797_v5, %v2787_v13  ;;  %v13681_v18 = vpack.c.bf16 %v2800_v9, %v14805_v8 }
 0x16a   : > { %12421 = vmatmul.mubr.f32.vlgmr.msra.gmra.mrb[0].mxu0 %v14586_v51  ;;  %v13690_v19 = vpack.c.bf16 %v2787_v13, %v2780_v10 }
 0x16b   : > { %13574 = vmatpush3.bf16.msra.mxu1 %v13573_v40  ;;  %13631 = vmatpush3.bf16.msra.mxu0 %v14651_v24  ;;  %v893_v40 = vand.u32 4294901760, %v892_v34  ;;  %v2789_v26 = vand.u32 4294901760, %v2788_v16  ;;  %v11792_v34 = vld [vmem:[%s15555_s5 + $0x28] sm:$0xff] }
 0x16c   : > { %13593 = vmatprep.subr.bf16.mxu1 %v14430_v12  ;;  %13632 = vmatprep.subr.bf16.mxu0 %v14430_v12  ;;  %v3682_v37 = vand.u32 4294901760, %v11792_v34 }
 0x16d   : > { %12497 = vmatprep.mubr.msk.f32.mxu0 %vm14431_vm1, %v14432_v22  ;;  %v13600_v45 = vpack.c.bf16 %v893_v40, %v886_v39  ;;  %v13672_v29 = vpack.c.bf16 %v2789_v26, %v2782_v25  ;;  %v3685_v40 = vand.u32 4294901760, %v11793_v38 }
 0x16e   : > { %12388 = vmatmul.mubr.f32.vlgmr.msra.gmra.mrb[0].mxu1 %v14589_v52  ;;  %v3766_v39 = vsub.f32 %v11792_v34, %v3682_v37 }
 0x16f   : > { %13595 = vmatpush3.bf16.msra.mxu1 %v14676_v32  ;;  %13634 = vmatpush3.bf16.msra.mxu0 %v14678_v17  ;;  %v3773_v42 = vsub.f32 %v11793_v38, %v3685_v40 }
 0x170   : > { %13596 = vmatprep.subr.bf16.mxu1 %v14430_v12  ;;  %13635 = vmatprep.subr.bf16.mxu0 %v14430_v12 }
 0x171   : > { %12431 = vmatprep.mubr.msk.f32.mxu1 %vm14431_vm1, %v14432_v22 }
 0x172   : > { %12498 = vmatmul.mubr.f32.vlgmr.msra.gmra.mrb[2].mxu0 %v14612_v61 }
 0x173   : > { %13598 = vmatpush3.bf16.msra.mxu1 %v14704_v20  ;;  %13637 = vmatpush3.bf16.msra.mxu0 %v13636_v21  ;;  %v3759_v21 = vsub.f32 %v11791_v33, %v3679_v36 }
 0x174   : > { %13599 = vmatprep.subr.bf16.mxu1 %v14430_v12  ;;  %13638 = vmatprep.subr.bf16.mxu0 %v14430_v12 }
 0x175   : > { %12508 = vmatprep.mubr.msk.f32.mxu0 %vm14431_vm1, %v14432_v22  ;;  %v3760_v44 = vand.u32 4294901760, %v3759_v21  ;;  %v13750_v0 = vpack.c.bf16 %v3766_v39, %v3759_v21 }
 0x176   : > { %12432 = vmatmul.mubr.f32.vlgmr.msra.gmra.mrb[2].mxu1 %v14612_v61 }
 0x177   : > { %13601 = vmatpush3.bf16.msra.mxu1 %v13600_v45  ;;  %13640 = vmatpush3.bf16.msra.mxu0 %v13639_v46  ;;  %v3767_v45 = vand.u32 4294901760, %v3766_v39  ;;  %v13738_v46 = vpack.c.bf16 %v3682_v37, %v3679_v36  ;;  %v3761_v47 = vsub.f32 %v3759_v21, %v3760_v44 }
 0x178   : > { %13602 = vmatprep.subr.bf16.mxu1 %v14430_v12  ;;  %13641 = vmatprep.subr.bf16.mxu0 %v14430_v12 }
 0x179   : > { %12442 = vmatprep.mubr.msk.f32.mxu1 %vm14431_vm1, %v14432_v22  ;;  %v3768_v48 = vsub.f32 %v3766_v39, %v3767_v45  ;;  %v13762_v2 = vpack.c.bf16 %v3767_v45, %v3760_v44 }
 0x17a   : > { %12509 = vmatmul.mubr.f32.vlgmr.msra.gmra.mrb[2].mxu0 %v14586_v51 }
 0x17b   : > { %13604 = vmatpush3.bf16.msra.mxu1 %v13603_v49  ;;  %13643 = vmatpush3.bf16.msra.mxu0 %v13642_v50  ;;  %v3774_v49 = vand.u32 4294901760, %v3773_v42 }
 0x17c   : > { %13605 = vmatprep.subr.bf16.mxu1 %v14430_v12  ;;  %13644 = vmatprep.subr.bf16.mxu0 %v14430_v12 }
 0x17d   : > { %12519 = vmatprep.mubr.msk.f32.mxu0 %vm14431_vm1, %v14432_v22 }
 0x17e   : > { %12443 = vmatmul.mubr.f32.vlgmr.msra.gmra.mrb[2].mxu1 %v14586_v51 }
 0x17f   : > { %13607 = vmatpush3.bf16.msra.mxu1 %v13606_v53  ;;  %13646 = vmatpush3.bf16.msra.mxu0 %v13645_v54  ;;  %v3762_v54 = vand.u32 4294901760, %v3761_v47 }
 0x180   : > { %13608 = vmatprep.subr.bf16.mxu1 %v14430_v12  ;;  %13647 = vmatprep.subr.bf16.mxu0 %v14430_v12 }
 0x181   : > { %12453 = vmatprep.mubr.msk.f32.mxu1 %vm14431_vm1, %v14432_v22 }
 0x182   : > { %12520 = vmatmul.mubr.f32.vlgmr.msra.gmra.mrb[2].mxu0 %v14589_v52 }
 0x183   : > { %13610 = vmatpush3.bf16.msra.mxu1 %v13609_v56  ;;  %13649 = vmatpush3.bf16.msra.mxu0 %v14651_v24  ;;  %v3769_v56 = vand.u32 4294901760, %v3768_v48 }
 0x184   : > { %13611 = vmatprep.subr.bf16.mxu1 %v14430_v12  ;;  %13650 = vmatprep.subr.bf16.mxu0 %v14430_v12 }
 0x185   : > { %12530 = vmatprep.mubr.msk.f32.mxu0 %vm14431_vm1, %v14432_v22  ;;  %v13744_v59 = vpack.c.bf16 %v3769_v56, %v3762_v54 }
 0x186   : > { %12454 = vmatmul.mubr.f32.vlgmr.msra.gmra.mrb[2].mxu1 %v14589_v52 }
 0x187   : > { %13613 = vmatpush3.bf16.msra.mxu1 %v14676_v32  ;;  %13652 = vmatpush3.bf16.msra.mxu0 %v14678_v17 }
 0x188   : > { %13614 = vmatprep.subr.bf16.mxu1 %v14430_v12  ;;  %13653 = vmatprep.subr.bf16.mxu0 %v14430_v12 }
 0x189   : > { %12464 = vmatprep.mubr.msk.f32.mxu1 %vm14431_vm1, %v14432_v22 }
 0x18a   : > { %12531 = vmatmul.mubr.f32.vlgmr.msra.gmra.mrb[2].mxu0 %v14598_v55 }
 0x18b   : > { %13616 = vmatpush3.bf16.msra.mxu1 %v14704_v20  ;;  %13655 = vmatpush3.bf16.msra.mxu0 %v13654_v57  ;;  %v3775_v57 = vsub.f32 %v3773_v42, %v3774_v49 }
 0x18c   : > { %13617 = vmatprep.subr.bf16.mxu1 %v14430_v12  ;;  %13656 = vmatprep.subr.bf16.mxu0 %v14430_v12 }
 0x18d   : > { %12541 = vmatprep.mubr.msk.f32.mxu0 %vm14431_vm1, %v14432_v22 }
 0x18e   : > { %12465 = vmatmul.mubr.f32.vlgmr.msra.gmra.mrb[2].mxu1 %v14598_v55 }
 0x18f   : > { %13619 = vmatpush3.bf16.msra.mxu1 %v13618_v60  ;;  %13658 = vmatpush3.bf16.msra.mxu0 %v13657_v62  ;;  %v3776_v60 = vand.u32 4294901760, %v3775_v57  ;;  %v11789_v57 = vld [vmem:[%s15554_s4 + $0x30] sm:$0xff] }
 0x190   : > { %13620 = vmatprep.subr.bf16.mxu1 %v14430_v12  ;;  %13659 = vmatprep.subr.bf16.mxu0 %v14430_v12 }
 0x191   : > { %12475 = vmatprep.mubr.msk.f32.mxu1 %vm14431_vm1, %v14432_v22 }
 0x192   : > { %12542 = vmatmul.mubr.f32.vlgmr.msra.gmra.mrb[2].mxu0 %v14586_v51 }
 0x193   : > { %13622 = vmatpush3.bf16.msra.mxu1 %v13621_v3  ;;  %13661 = vmatpush3.bf16.msra.mxu0 %v14651_v24  ;;  %v2801_v24 = vand.u32 4294901760, %v2800_v9 }
 0x194   : > { %13623 = vmatprep.subr.bf16.mxu1 %v14430_v12  ;;  %13662 = vmatprep.subr.bf16.mxu0 %v14430_v12 }
 0x195   : > { %12552 = vmatprep.mubr.msk.f32.mxu0 %vm14431_vm1, %v14432_v22  ;;  %v2802_v28 = vsub.f32 %v2800_v9, %v2801_v24  ;;  %v13693_v35 = vpack.c.bf16 %v2801_v24, %v2794_v23 }
 0x196   : > { %12476 = vmatmul.mubr.f32.vlgmr.msra.gmra.mrb[2].mxu1 %v14586_v51 }
 0x197   : > { %13625 = vmatpush3.bf16.msra.mxu1 %v14676_v32  ;;  %13664 = vmatpush3.bf16.msra.mxu0 %v14678_v17  ;;  %v2803_v31 = vand.u32 4294901760, %v2802_v28  ;;  %v13678_v17 = vpack.c.bf16 %v14797_v5, %v14795_v4 }
 0x198   : > { %13626 = vmatprep.subr.bf16.mxu1 %v14430_v12  ;;  %13665 = vmatprep.subr.bf16.mxu0 %v14430_v12 }
 0x199   : > { %12486 = vmatprep.mubr.msk.f32.mxu1 %vm14431_vm1, %v14432_v22  ;;  %v13675_v32 = vpack.c.bf16 %v2803_v31, %v2796_v30 }
 0x19a   : > { %12553 = vmatmul.mubr.f32.vlgmr.msra.gmra.mrb[2].mxu0 %v14586_v51 }
 0x19b   : > { %13628 = vmatpush3.bf16.msra.mxu1 %v14704_v20  ;;  %13667 = vmatpush3.bf16.msra.mxu0 %v14814_v14  ;;  %v11794_v20 = vld [vmem:[%s15555_s5 + $0x38] sm:$0xff] }
 0x19c   : > { %13668 = vmatprep.subr.bf16.mxu0 %v14430_v12  ;;  %12623 = vmatprep.mubr.msk.f32.mxu0 %vm14431_vm1, %v14432_v22  ;;  %v3688_v41 = vand.u32 4294901760, %v11794_v20 }
 0x19d   : > { %12555 = vmatprep.subr.mxu1 %v14432_v22 }
 0x19e   : > { %12487 = vmatmul.mubr.f32.vlgmr.msra.gmra.mrb[2].mxu1 %v14586_v51  ;;  %v3780_v43 = vsub.f32 %v11794_v20, %v3688_v41  ;;  %v13741_v53 = vpack.c.bf16 %v3688_v41, %v3685_v40 }
 0x19f   : > { %13670 = vmatpush3.bf16.msra.mxu0 %v14826_v11  ;;  %12557 = vmatprep.mubr.msk.f32.mxu1 %vm14431_vm1, %v14432_v22 }
 0x1a0   : > { %13671 = vmatprep.subr.bf16.mxu0 %v14430_v12  ;;  %v3781_v50 = vand.u32 4294901760, %v3780_v43  ;;  %v13753_v1 = vpack.c.bf16 %v3780_v43, %v3773_v42 }
 0x1a2   : > { %12624 = vmatmul.mubr.f32.vlgmr.msra.gmra.mrb[4].mxu0 %v14612_v61  ;;  %v3782_v58 = vsub.f32 %v3780_v43, %v3781_v50  ;;  %v13765_v3 = vpack.c.bf16 %v3781_v50, %v3774_v49  ;;  %v11787_v50 = vld [vmem:[%s15554_s4 + $0x20] sm:$0xff] }
 0x1a3   : > { %13673 = vmatpush3.bf16.msra.mxu0 %v13672_v29  ;;  %12634 = vmatprep.mubr.msk.f32.mxu0 %vm14431_vm1, %v14432_v22  ;;  %v3189_v54 = vand.u32 4294901760, %v11787_v50 }
 0x1a4   : > { %13674 = vmatprep.subr.bf16.mxu0 %v14430_v12  ;;  %v3783_v62 = vand.u32 4294901760, %v3782_v58  ;;  %v11790_v58 = vld [vmem:[%s15554_s4 + $0x38] sm:$0xff] }
 0x1a6   : > { %v13747_v63 = vpack.c.bf16 %v3783_v62, %v3776_v60  ;;  %v3195_v62 = vand.u32 4294901760, %v11789_v57 }
 0x1a7   : > { %13676 = vmatpush3.bf16.msra.mxu0 %v13675_v32 }
 0x1a8   : > { %13677 = vmatprep.subr.bf16.mxu0 %v14430_v12 }
 0x1aa   : > { %12635 = vmatmul.mubr.f32.vlgmr.msra.gmra.mrb[4].mxu0 %v14586_v51 }
 0x1ab   : > { %13679 = vmatpush3.bf16.msra.mxu0 %v13678_v17  ;;  %12645 = vmatprep.mubr.msk.f32.mxu0 %vm14431_vm1, %v14432_v22 }
 0x1ac   : > { %13680 = vmatprep.subr.bf16.mxu0 %v14430_v12 }
 0x1af   : > { %13682 = vmatpush3.bf16.msra.mxu0 %v13681_v18 }
 0x1b0   : > { %13683 = vmatprep.subr.bf16.mxu0 %v14430_v12 }
 0x1b2   : > { %12646 = vmatmul.mubr.f32.vlgmr.msra.gmra.mrb[4].mxu0 %v14589_v52 }
 0x1b3   : > { %13685 = vmatpush3.bf16.msra.mxu0 %v14814_v14  ;;  %12656 = vmatprep.mubr.msk.f32.mxu0 %vm14431_vm1, %v14432_v22 }
 0x1b4   : > { %13686 = vmatprep.subr.bf16.mxu0 %v14430_v12 }
 0x1b7   : > { %13688 = vmatpush3.bf16.msra.mxu0 %v14826_v11 }
 0x1b8   : > { %13689 = vmatprep.subr.bf16.mxu0 %v14430_v12 }
 0x1ba   : > { %12657 = vmatmul.mubr.f32.vlgmr.msra.gmra.mrb[4].mxu0 %v14598_v55 }
 0x1bb   : > { %13691 = vmatpush3.bf16.msra.mxu0 %v13690_v19  ;;  %12667 = vmatprep.mubr.msk.f32.mxu0 %vm14431_vm1, %v14432_v22 }
 0x1bc   : > { %13692 = vmatprep.subr.bf16.mxu0 %v14430_v12 }
 0x1bf   : > { %13694 = vmatpush3.bf16.msra.mxu0 %v13693_v35 }
 0x1c0   : > { %13695 = vmatprep.subr.bf16.mxu0 %v14430_v12 }
 0x1c2   : > { %12668 = vmatmul.mubr.f32.vlgmr.msra.gmra.mrb[4].mxu0 %v14586_v51 }
 0x1c3   : > { %13697 = vmatpush3.bf16.msra.mxu0 %v14814_v14  ;;  %12678 = vmatprep.mubr.msk.f32.mxu0 %vm14431_vm1, %v14432_v22 }
 0x1c4   : > { %13698 = vmatprep.subr.bf16.mxu0 %v14430_v12 }
 0x1c7   : > { %13700 = vmatpush3.bf16.msra.mxu0 %v14826_v11 }
 0x1c8   : > { %13737 = vmatprep.subr.bf16.mxu0 %v14430_v12 }
 0x1ca   : > { %12679 = vmatmul.mubr.f32.vlgmr.msra.gmra.mrb[4].mxu0 %v14586_v51 }
 0x1cb   : > { %13739 = vmatpush3.bf16.msra.mxu0 %v13738_v46  ;;  %12755 = vmatprep.mubr.msk.f32.mxu0 %vm14431_vm1, %v14432_v22 }
 0x1cc   : > { %13740 = vmatprep.subr.bf16.mxu0 %v14430_v12 }
 0x1cf   : > { %13742 = vmatpush3.bf16.msra.mxu0 %v13741_v53 }
 0x1d0   : > { %13743 = vmatprep.subr.bf16.mxu0 %v14430_v12 }
 0x1d2   : > { %12756 = vmatmul.mubr.f32.vlgmr.msra.gmra.mrb[6].mxu0 %v14612_v61 }
 0x1d3   : > { %13745 = vmatpush3.bf16.msra.mxu0 %v13744_v59  ;;  %12766 = vmatprep.mubr.msk.f32.mxu0 %vm14431_vm1, %v14432_v22  ;;  %v3269_v59 = vsub.f32 %v11787_v50, %v3189_v54 }
 0x1d4   : > { %13746 = vmatprep.subr.bf16.mxu0 %v14430_v12 }
 0x1d7   : > { %13748 = vmatpush3.bf16.msra.mxu0 %v13747_v63  ;;  %v3198_v63 = vand.u32 4294901760, %v11790_v58 }
 0x1d8   : > { %13749 = vmatprep.subr.bf16.mxu0 %v14430_v12 }
 0x1da   : > { %12767 = vmatmul.mubr.f32.vlgmr.msra.gmra.mrb[6].mxu0 %v14586_v51 }
 0x1db   : > { %13751 = vmatpush3.bf16.msra.mxu0 %v13750_v0  ;;  %12777 = vmatprep.mubr.msk.f32.mxu0 %vm14431_vm1, %v14432_v22  ;;  %v3283_v0 = vsub.f32 %v11789_v57, %v3195_v62 }
 0x1dc   : > { %13752 = vmatprep.subr.bf16.mxu0 %v14430_v12 }
 0x1df   : > { %13754 = vmatpush3.bf16.msra.mxu0 %v13753_v1  ;;  %v3290_v1 = vsub.f32 %v11790_v58, %v3198_v63 }
 0x1e0   : > { %13755 = vmatprep.subr.bf16.mxu0 %v14430_v12 }
 0x1e2   : > { %12778 = vmatmul.mubr.f32.vlgmr.msra.gmra.mrb[6].mxu0 %v14589_v52 }
 0x1e3   : > { %13757 = vmatpush3.bf16.msra.mxu0 %v13738_v46  ;;  %12788 = vmatprep.mubr.msk.f32.mxu0 %vm14431_vm1, %v14432_v22 }
 0x1e4   : > { %13758 = vmatprep.subr.bf16.mxu0 %v14430_v12 }
 0x1e7   : > { %13760 = vmatpush3.bf16.msra.mxu0 %v13741_v53 }
 0x1e8   : > { %13761 = vmatprep.subr.bf16.mxu0 %v14430_v12 }
 0x1ea   : > { %12789 = vmatmul.mubr.f32.vlgmr.msra.gmra.mrb[6].mxu0 %v14598_v55 }
 0x1eb   : > { %13763 = vmatpush3.bf16.msra.mxu0 %v13762_v2  ;;  %12799 = vmatprep.mubr.msk.f32.mxu0 %vm14431_vm1, %v14432_v22  ;;  %v3270_v2 = vand.u32 4294901760, %v3269_v59 }
 0x1ec   : > { %13764 = vmatprep.subr.bf16.mxu0 %v14430_v12 }
 0x1ef   : > { %13766 = vmatpush3.bf16.msra.mxu0 %v13765_v3 }
 0x1f0   : > { %13767 = vmatprep.subr.bf16.mxu0 %v14430_v12 }
 0x1f2   : > { %12800 = vmatmul.mubr.f32.vlgmr.msra.gmra.mrb[6].mxu0 %v14586_v51 }
 0x1f3   : > { %13769 = vmatpush3.bf16.msra.mxu0 %v13738_v46  ;;  %12810 = vmatprep.mubr.msk.f32.mxu0 %vm14431_vm1, %v14432_v22 }
 0x1f4   : > { %13770 = vmatprep.subr.bf16.mxu0 %v14430_v12 }
 0x1f7   : > { %13772 = vmatpush3.bf16.msra.mxu0 %v13741_v53  ;;  %v11788_v53 = vld [vmem:[%s15554_s4 + $0x28] sm:$0xff] }
 0x1f8   : > { %13773 = vmatprep.subr.bf16.mxu0 %v14430_v12  ;;  %v3192_v56 = vand.u32 4294901760, %v11788_v53 }
 0x1fa   : > { %12811 = vmatmul.mubr.f32.vlgmr.msra.gmra.mrb[6].mxu0 %v14586_v51  ;;  %v3276_v60 = vsub.f32 %v11788_v53, %v3192_v56 }
 0x1fb   : > { %12877 = vmatprep.mubr.msk.f32.mxu0 %vm14431_vm1, %v14432_v22 }
 0x1fc   : > { %v3277_v3 = vand.u32 4294901760, %v3276_v60 }
 0x23d   : > { %v794_v4 = vpop.f32.mrb[0].mxu0 }
 0x23e   : > { %v12422_v5 = vpop.f32.mrb[1].mxu0 }
 0x23f   : > { %v3271_v5 = vsub.f32 %v3269_v59, %v3270_v2 }
 0x241   : > { %v559_v6 = vpop.f32.mrb[0].mxu1 }
 0x242   : > { %v14061_v7 = vadd.f32 %v794_v4, %v559_v6  ;;  %v12389_v8 = vpop.f32.mrb[1].mxu1  ;;  %v13702_v4 = vpack.c.bf16 %v3192_v56, %v3189_v54  ;;  %v3278_v6 = vsub.f32 %v3276_v60, %v3277_v3 }
 0x243   : > { %v3291_v8 = vand.u32 4294901760, %v3290_v1 }
 0x244   : > { %v1778_v9 = vsel %vm1776_vm2, %v14061_v7, 0  ;;  %v3284_v7 = vand.u32 4294901760, %v3283_v0 }
 0x245   : > { %v1849_v10 = vand.u32 4294901760, %v1778_v9 }
 0x247   : > { %v1850_v13 = vsub.f32 %v1778_v9, %v1849_v10  ;;  %v13705_v9 = vpack.c.bf16 %v3198_v63, %v3195_v62 }
 0x249   : > { %v1851_v15 = vand.u32 4294901760, %v1850_v13 }
 0x24b   : > { %v1852_v25 = vsub.f32 %v1850_v13, %v1851_v15 }
 0x24d   : > { %v1853_v28 = vand.u32 4294901760, %v1852_v25  ;;  %v13714_v25 = vpack.c.bf16 %v3276_v60, %v3269_v59 }
 0x26d   : > { %v1772_v14 = vpop.f32.mrb[2].mxu0 }
 0x26e   : > { %v12554_v16 = vpop.f32.mrb[3].mxu0  ;;  %v2244_v18 = vand.u32 4294901760, %v1772_v14 }
 0x270   : > { %v2321_v39 = vsub.f32 %v1772_v14, %v2244_v18  ;;  %v3285_v14 = vsub.f32 %v3283_v0, %v3284_v7 }
 0x271   : > { %v1283_v23 = vpop.f32.mrb[2].mxu1 }
 0x272   : > { %v1781_v24 = vsel %vm1776_vm2, %v1283_v23, 0  ;;  %v12488_v11 = vpop.f32.mrb[3].mxu1  ;;  %v2322_v43 = vand.u32 4294901760, %v2321_v39  ;;  %v3286_v23 = vand.u32 4294901760, %v3285_v14 }
 0x273   : > { %v1784_v26 = vand.u32 4294901760, %v1781_v24 }
 0x274   : > { %v2323_v46 = vsub.f32 %v2321_v39, %v2322_v43 }
 0x275   : > { %v1861_v27 = vsub.f32 %v1781_v24, %v1784_v26  ;;  %12556 = vmatpush3.xpose.msra.mxu1 %v1784_v26 }
 0x276   : > { %12560 = vmatprep.subr.mxu1 %v14432_v22  ;;  %v2324_v49 = vand.u32 4294901760, %v2323_v46 }
 0x277   : > { %v1862_v29 = vand.u32 4294901760, %v1861_v27 }
 0x278   : > { %12558 = vmatmul.mubr.f32.vlgmr.msra.gmra.mrb[4].mxu1 %v1853_v28  ;;  %v13729_v28 = vpack.c.bf16 %v3291_v8, %v3284_v7 }
 0x279   : > { %v1863_v30 = vsub.f32 %v1861_v27, %v1862_v29  ;;  %12562 = vmatprep.mubr.msk.f32.mxu1 %vm14431_vm1, %v14432_v22 }
 0x27b   : > { %v1864_v31 = vand.u32 4294901760, %v1863_v30 }
 0x27d   : > { %12561 = vmatpush3.xpose.msra.mxu1 %v1864_v31 }
 0x27e   : > { %12565 = vmatprep.subr.mxu1 %v14432_v22 }
 0x280   : > { %12563 = vmatmul.mubr.f32.vlgmr.msra.gmra.mrb[4].mxu1 %v1849_v10 }
 0x281   : > { %12566 = vmatpush3.xpose.msra.mxu1 %v1861_v27  ;;  %12567 = vmatprep.mubr.msk.f32.mxu1 %vm14431_vm1, %v14432_v22  ;;  %v13726_v27 = vpack.c.bf16 %v3277_v3, %v3270_v2  ;;  %v11798_v2 = vld [vmem:[%s15553_s3 + $0x48] sm:$0xff] }
 0x282   : > { %12570 = vmatprep.subr.mxu1 %v14432_v22 }
 0x288   : > { %12568 = vmatmul.mubr.f32.vlgmr.msra.gmra.mrb[4].mxu1 %v1850_v13  ;;  %v3279_v13 = vand.u32 4294901760, %v3278_v6  ;;  %v11800_v6 = vld [vmem:[%s15553_s3 + $0x58] sm:$0xff] }
 0x289   : > { %12571 = vmatpush3.xpose.msra.mxu1 %v1784_v26  ;;  %12572 = vmatprep.mubr.msk.f32.mxu1 %vm14431_vm1, %v14432_v22 }
 0x28a   : > { %12575 = vmatprep.subr.mxu1 %v14432_v22 }
 0x290   : > { %12573 = vmatmul.mubr.f32.vlgmr.msra.gmra.mrb[4].mxu1 %v1851_v15  ;;  %v3292_v15 = vsub.f32 %v3290_v1, %v3291_v8 }
 0x291   : > { %12576 = vmatpush3.xpose.msra.mxu1 %v1862_v29  ;;  %12577 = vmatprep.mubr.msk.f32.mxu1 %vm14431_vm1, %v14432_v22 }
 0x292   : > { %12580 = vmatprep.subr.mxu1 %v14432_v22  ;;  %v3293_v24 = vand.u32 4294901760, %v3292_v15 }
 0x294   : > { %v13711_v11 = vpack.c.bf16 %v3293_v24, %v3286_v23 }
 0x298   : > { %12578 = vmatmul.mubr.f32.vlgmr.msra.gmra.mrb[4].mxu1 %v1849_v10 }
 0x299   : > { %12581 = vmatpush3.xpose.msra.mxu1 %v1784_v26  ;;  %12582 = vmatprep.mubr.msk.f32.mxu1 %vm14431_vm1, %v14432_v22  ;;  %v13717_v26 = vpack.c.bf16 %v3290_v1, %v3283_v0 }
 0x29a   : > { %12585 = vmatprep.subr.mxu1 %v14432_v22 }
 0x29d   : > { %v14935_v32 = vpop.f32.mrb[4].mxu0 }
 0x29e   : > { %v12680_v17 = vpop.f32.mrb[5].mxu0  ;;  %v4164_v31 = vsel %vm1776_vm2, %v14935_v32, 0 }
 0x29f   : > { %v4235_v17 = vand.u32 4294901760, %v4164_v31 }
 0x2a0   : > { %12583 = vmatmul.mubr.f32.vlgmr.msra.gmra.mrb[4].mxu1 %v1849_v10  ;;  %v3272_v10 = vand.u32 4294901760, %v3271_v5  ;;  %v11799_v5 = vld [vmem:[%s15553_s3 + $0x50] sm:$0xff] }
 0x2a1   : > { %12586 = vmatpush3.msra.mxu1 %v2244_v18  ;;  %12587 = vmatprep.mubr.msk.f32.mxu1 %vm14431_vm1, %v14432_v22 }
 0x2a2   : > { %12590 = vmatprep.subr.mxu1 %v14432_v22  ;;  %v13708_v16 = vpack.c.bf16 %v3279_v13, %v3272_v10  ;;  %v6018_v10 = vand.u32 4294901760, %v11800_v6 }
 0x2a4   : > { %v6110_v14 = vsub.f32 %v11800_v6, %v6018_v10 }
 0x2cd   : > { %v14940_v19 = vpop.f32.mrb[6].mxu0 }
 0x2ce   : > { %v12812_v33 = vpop.f32.mrb[7].mxu0 }
 0x373   : > { %v2225_v34 = vpop.f32.mrb[4].mxu1 }
 0x374   : > { %v2229_v35 = vmul.f32 0.25, %v2225_v34  ;;  %v12584_v36 = vpop.f32.mrb[5].mxu1 }
 0x376   : > { %v2231_v37 = vsel %vm2230_vm3, %v2229_v35, -inf }
 0x377   : > { %2232 = vmax.xlane.f32.xlu1 %v2231_v37 }
 0x404   : > { %v2233_v38 = vpop.xlane.xlu1 %2232 }
 0x405   : > { %v2234_v20 = vsub.f32 %v2229_v35, %v2233_v38 }
 0x407   : > { %v2235_v21 = vmul.f32 1.442695, %v2234_v20 }
 0x409   : > { %14350 = vpow2.f32 %v2235_v21 }
 0x413   : > { %v14943_v40 = vpop.eup %14350 }
 0x414   : > { %v2241_v41 = vsel %vm2230_vm3, %v14943_v40, 0 }
 0x415   : > { %v2309_v42 = vand.u32 4294901760, %v2241_v41 }
 0x417   : > { %v2310_v44 = vsub.f32 %v2241_v41, %v2309_v42 }
 0x419   : > { %v2311_v45 = vand.u32 4294901760, %v2310_v44 }
 0x41b   : > { %v2312_v47 = vsub.f32 %v2310_v44, %v2311_v45 }
 0x41d   : > { %v2313_v48 = vand.u32 4294901760, %v2312_v47  ;;  %v2237_v47 = vsel %vm2230_vm3, %v14943_v40, 0.0 }
 0x41f   : > { %12588 = vmatmul.mubr.f32.vlgmr.msra.gmra.mrb[6].mxu1 %v2313_v48 }
 0x420   : > { %12591 = vmatpush3.msra.mxu1 %v2324_v49  ;;  %12592 = vmatprep.mubr.msk.f32.mxu1 %vm14431_vm1, %v14432_v22 }
 0x421   : > { %12595 = vmatprep.subr.mxu1 %v14432_v22 }
 0x427   : > { %12593 = vmatmul.mubr.f32.vlgmr.msra.gmra.mrb[6].mxu1 %v2309_v42 }
 0x428   : > { %12596 = vmatpush3.msra.mxu1 %v2321_v39  ;;  %12597 = vmatprep.mubr.msk.f32.mxu1 %vm14431_vm1, %v14432_v22 }
 0x429   : > { %12600 = vmatprep.subr.mxu1 %v14432_v22 }
 0x42f   : > { %12598 = vmatmul.mubr.f32.vlgmr.msra.gmra.mrb[6].mxu1 %v2310_v44 }
 0x430   : > { %12601 = vmatpush3.msra.mxu1 %v2244_v18  ;;  %12602 = vmatprep.mubr.msk.f32.mxu1 %vm14431_vm1, %v14432_v22 }
 0x431   : > { %12605 = vmatprep.subr.mxu1 %v14432_v22 }
 0x437   : > { %12603 = vmatmul.mubr.f32.vlgmr.msra.gmra.mrb[6].mxu1 %v2311_v45 }
 0x438   : > { %12606 = vmatpush3.msra.mxu1 %v2322_v43  ;;  %12607 = vmatprep.mubr.msk.f32.mxu1 %vm14431_vm1, %v14432_v22 }
 0x439   : > { %12610 = vmatprep.subr.mxu1 %v14432_v22 }
 0x43f   : > { %12608 = vmatmul.mubr.f32.vlgmr.msra.gmra.mrb[6].mxu1 %v2309_v42 }
 0x440   : > { %12611 = vmatpush3.msra.mxu1 %v2244_v18  ;;  %12612 = vmatprep.mubr.msk.f32.mxu1 %vm14431_vm1, %v14432_v22  ;;  %v4236_v18 = vsub.f32 %v4164_v31, %v4235_v17 }
 0x441   : > { %13701 = vmatprep.subr.bf16.mxu1 %v14430_v12 }
 0x442   : > { %v4237_v33 = vand.u32 4294901760, %v4236_v18 }
 0x444   : > { %v4238_v35 = vsub.f32 %v4236_v18, %v4237_v33 }
 0x446   : > { %v4239_v21 = vand.u32 4294901760, %v4238_v35 }
 0x447   : > { %12613 = vmatmul.mubr.f32.vlgmr.msra.gmra.mrb[6].mxu1 %v2309_v42  ;;  %v4629_v42 = vand.u32 4294901760, %v14940_v19 }
 0x448   : > { %13703 = vmatpush3.bf16.msra.mxu1 %v13702_v4  ;;  %12689 = vmatprep.mubr.msk.f32.mxu1 %vm14431_vm1, %v14432_v22 }
 0x449   : > { %13704 = vmatprep.subr.bf16.mxu1 %v14430_v12  ;;  %v4706_v53 = vsub.f32 %v14940_v19, %v4629_v42  ;;  %v11797_v19 = vld [vmem:[%s15553_s3 + $0x40] sm:$0xff] }
 0x44a   : > { %v6009_v3 = vand.u32 4294901760, %v11797_v19 }
 0x44b   : > { %v4707_v59 = vand.u32 4294901760, %v4706_v53 }
 0x44c   : > { %13706 = vmatpush3.bf16.msra.mxu1 %v13705_v9  ;;  %v6089_v7 = vsub.f32 %v11797_v19, %v6009_v3 }
 0x44d   : > { %13707 = vmatprep.subr.bf16.mxu1 %v14430_v12  ;;  %v4708_v63 = vsub.f32 %v4706_v53, %v4707_v59 }
 0x44e   : > { %v6090_v15 = vand.u32 4294901760, %v6089_v7 }
 0x44f   : > { %12690 = vmatmul.mubr.f32.vlgmr.msra.gmra.mrb[8].mxu1 %v14612_v61  ;;  %v4709_v1 = vand.u32 4294901760, %v4708_v63 }
 0x450   : > { %13709 = vmatpush3.bf16.msra.mxu1 %v13708_v16  ;;  %12700 = vmatprep.mubr.msk.f32.mxu1 %vm14431_vm1, %v14432_v22  ;;  %v6091_v24 = vsub.f32 %v6089_v7, %v6090_v15 }
 0x451   : > { %13710 = vmatprep.subr.bf16.mxu1 %v14430_v12 }
 0x454   : > { %13712 = vmatpush3.bf16.msra.mxu1 %v13711_v11 }
 0x455   : > { %13713 = vmatprep.subr.bf16.mxu1 %v14430_v12 }
 0x457   : > { %12701 = vmatmul.mubr.f32.vlgmr.msra.gmra.mrb[8].mxu1 %v14586_v51 }
 0x458   : > { %13715 = vmatpush3.bf16.msra.mxu1 %v13714_v25  ;;  %12711 = vmatprep.mubr.msk.f32.mxu1 %vm14431_vm1, %v14432_v22 }
 0x459   : > { %13716 = vmatprep.subr.bf16.mxu1 %v14430_v12 }
 0x45c   : > { %13718 = vmatpush3.bf16.msra.mxu1 %v13717_v26  ;;  %v6111_v26 = vand.u32 4294901760, %v6110_v14 }
 0x45d   : > { %13719 = vmatprep.subr.bf16.mxu1 %v14430_v12 }
 0x45f   : > { %12712 = vmatmul.mubr.f32.vlgmr.msra.gmra.mrb[8].mxu1 %v14589_v52 }
 0x460   : > { %13721 = vmatpush3.bf16.msra.mxu1 %v13702_v4  ;;  %12722 = vmatprep.mubr.msk.f32.mxu1 %vm14431_vm1, %v14432_v22 }
 0x461   : > { %13722 = vmatprep.subr.bf16.mxu1 %v14430_v12 }
 0x464   : > { %13724 = vmatpush3.bf16.msra.mxu1 %v13705_v9 }
 0x465   : > { %13725 = vmatprep.subr.bf16.mxu1 %v14430_v12 }
 0x467   : > { %12723 = vmatmul.mubr.f32.vlgmr.msra.gmra.mrb[8].mxu1 %v14598_v55 }
 0x468   : > { %13727 = vmatpush3.bf16.msra.mxu1 %v13726_v27  ;;  %12733 = vmatprep.mubr.msk.f32.mxu1 %vm14431_vm1, %v14432_v22 }
 0x469   : > { %13728 = vmatprep.subr.bf16.mxu1 %v14430_v12 }
 0x46c   : > { %13730 = vmatpush3.bf16.msra.mxu1 %v13729_v28  ;;  %v6092_v28 = vand.u32 4294901760, %v6091_v24 }
 0x46d   : > { %13731 = vmatprep.subr.bf16.mxu1 %v14430_v12 }
 0x46f   : > { %12734 = vmatmul.mubr.f32.vlgmr.msra.gmra.mrb[8].mxu1 %v14586_v51 }
 0x470   : > { %13733 = vmatpush3.bf16.msra.mxu1 %v13702_v4  ;;  %12744 = vmatprep.mubr.msk.f32.mxu1 %vm14431_vm1, %v14432_v22  ;;  %v6012_v4 = vand.u32 4294901760, %v11798_v2 }
 0x471   : > { %13734 = vmatprep.subr.bf16.mxu1 %v14430_v12 }
 0x472   : > { %v6096_v8 = vsub.f32 %v11798_v2, %v6012_v4  ;;  %v13810_v23 = vpack.c.bf16 %v6012_v4, %v6009_v3 }
 0x474   : > { %13736 = vmatpush3.bf16.msra.mxu1 %v13705_v9  ;;  %v6015_v9 = vand.u32 4294901760, %v11799_v5  ;;  %v6097_v16 = vand.u32 4294901760, %v6096_v8 }
 0x475   : > { %12813 = vmatprep.subr.mxu1 %v14432_v22 }
 0x476   : > { %v6103_v13 = vsub.f32 %v11799_v5, %v6015_v9  ;;  %v6098_v11 = vsub.f32 %v6096_v8, %v6097_v16  ;;  %v13813_v27 = vpack.c.bf16 %v6018_v10, %v6015_v9  ;;  %v11796_v9 = vld [vmem:[%s15556_s6 + $0x18] sm:$0xff] }
 0x477   : > { %12745 = vmatmul.mubr.f32.vlgmr.msra.gmra.mrb[8].mxu1 %v14586_v51 }
 0x478   : > { %12815 = vmatprep.mubr.msk.f32.mxu1 %vm14431_vm1, %v14432_v22  ;;  %v6104_v25 = vand.u32 4294901760, %v6103_v13 }
 0x47a   : > { %v6105_v31 = vsub.f32 %v6103_v13, %v6104_v25 }
 0x51a   : > { %v15006_v29 = vpop.f32.mrb[6].mxu1 }
 0x51b   : > { %v12614_v30 = vpop.f32.mrb[7].mxu1 }
 0x51c   : > { %v6099_v30 = vand.u32 4294901760, %v6098_v11 }
 0x54a   : > { %v3669_v34 = vpop.f32.mrb[8].mxu1 }
 0x54b   : > { %v4167_v36 = vsel %vm1776_vm2, %v3669_v34, 0  ;;  %v12746_v37 = vpop.f32.mrb[9].mxu1 }
 0x54c   : > { %v4170_v38 = vand.u32 4294901760, %v4167_v36  ;;  %v13825_v37 = vpack.c.bf16 %v6110_v14, %v6103_v13  ;;  %v5086_v13 = vand.u32 4294901760, %v11796_v9 }
 0x54e   : > { %v4247_v20 = vsub.f32 %v4167_v36, %v4170_v38  ;;  %12814 = vmatpush3.xpose.msra.mxu1 %v4170_v38  ;;  %v13822_v36 = vpack.c.bf16 %v6096_v8, %v6089_v7  ;;  %v11795_v8 = vld [vmem:[%s15556_s6 + $0x10] sm:$0xff] }
 0x54f   : > { %12818 = vmatprep.subr.mxu1 %v14432_v22  ;;  %v5083_v10 = vand.u32 4294901760, %v11795_v8 }
 0x550   : > { %v4248_v39 = vand.u32 4294901760, %v4247_v20 }
 0x551   : > { %12816 = vmatmul.mubr.f32.vlgmr.msra.gmra.mrb[10].mxu1 %v4239_v21  ;;  %v11806_v21 = vld [vmem:[%s15555_s5 + $0x48] sm:$0xff] }
 0x552   : > { %v4249_v41 = vsub.f32 %v4247_v20, %v4248_v39  ;;  %12820 = vmatprep.mubr.msk.f32.mxu1 %vm14431_vm1, %v14432_v22 }
 0x554   : > { %v4250_v32 = vand.u32 4294901760, %v4249_v41 }
 0x556   : > { %12819 = vmatpush3.xpose.msra.mxu1 %v4250_v32  ;;  %v6992_v32 = vand.u32 4294901760, %v11806_v21 }
 0x557   : > { %12823 = vmatprep.subr.mxu1 %v14432_v22 }
 0x559   : > { %12821 = vmatmul.mubr.f32.vlgmr.msra.gmra.mrb[10].mxu1 %v4235_v17 }
 0x55a   : > { %12824 = vmatpush3.xpose.msra.mxu1 %v4247_v20  ;;  %12825 = vmatprep.mubr.msk.f32.mxu1 %vm14431_vm1, %v14432_v22  ;;  %v11805_v20 = vld [vmem:[%s15555_s5 + $0x40] sm:$0xff] }
 0x55b   : > { %12828 = vmatprep.subr.mxu1 %v14432_v22  ;;  %v6989_v41 = vand.u32 4294901760, %v11805_v20 }
 0x561   : > { %12826 = vmatmul.mubr.f32.vlgmr.msra.gmra.mrb[10].mxu1 %v4236_v18  ;;  %v13816_v18 = vpack.c.bf16 %v6099_v30, %v6092_v28 }
 0x562   : > { %12829 = vmatpush3.xpose.msra.mxu1 %v4170_v38  ;;  %12830 = vmatprep.mubr.msk.f32.mxu1 %vm14431_vm1, %v14432_v22 }
 0x563   : > { %12833 = vmatprep.subr.mxu1 %v14432_v22 }
 0x569   : > { %12831 = vmatmul.mubr.f32.vlgmr.msra.gmra.mrb[10].mxu1 %v4237_v33  ;;  %v6106_v33 = vand.u32 4294901760, %v6105_v31 }
 0x56a   : > { %12834 = vmatpush3.xpose.msra.mxu1 %v4248_v39  ;;  %12835 = vmatprep.mubr.msk.f32.mxu1 %vm14431_vm1, %v14432_v22  ;;  %v13837_v39 = vpack.c.bf16 %v6111_v26, %v6104_v25 }
 0x56b   : > { %12838 = vmatprep.subr.mxu1 %v14432_v22 }
 0x571   : > { %12836 = vmatmul.mubr.f32.vlgmr.msra.gmra.mrb[10].mxu1 %v4235_v17 }
 0x572   : > { %12839 = vmatpush3.xpose.msra.mxu1 %v4170_v38  ;;  %12840 = vmatprep.mubr.msk.f32.mxu1 %vm14431_vm1, %v14432_v22  ;;  %v13834_v38 = vpack.c.bf16 %v6097_v16, %v6090_v15  ;;  %v5161_v15 = vsub.f32 %v11795_v8, %v5083_v10  ;;  %v5168_v16 = vsub.f32 %v11796_v9, %v5086_v13  ;;  %v11803_v8 = vld [vmem:[%s15554_s4 + $0x50] sm:$0xff]  ;;  %v11804_v9 = vld [vmem:[%s15554_s4 + $0x58] sm:$0xff] }
 0x573   : > { %12843 = vmatprep.subr.mxu1 %v14432_v22 }
 0x574   : > { %v5169_v24 = vand.u32 4294901760, %v5168_v16  ;;  %v13780_v30 = vpack.c.bf16 %v5168_v16, %v5161_v15 }
 0x576   : > { %v5170_v25 = vsub.f32 %v5168_v16, %v5169_v24 }
 0x579   : > { %12841 = vmatmul.mubr.f32.vlgmr.msra.gmra.mrb[10].mxu1 %v4235_v17  ;;  %v6112_v17 = vsub.f32 %v6110_v14, %v6111_v26  ;;  %v13774_v14 = vpack.c.bf16 %v5086_v13, %v5083_v10 }
 0x57a   : > { %12844 = vmatpush3.msra.mxu1 %v4629_v42  ;;  %12845 = vmatprep.mubr.msk.f32.mxu1 %vm14431_vm1, %v14432_v22 }
 0x57b   : > { %12848 = vmatprep.subr.mxu1 %v14432_v22  ;;  %v6113_v34 = vand.u32 4294901760, %v6112_v17  ;;  %13775 = vmatpush3.bf16.msra.mxu0 %v13774_v14 }
 0x57c   : > { %13776 = vmatprep.subr.bf16.mxu0 %v14430_v12 }
 0x57d   : > { %v13819_v35 = vpack.c.bf16 %v6113_v34, %v6106_v33 }
 0x64c   : > { %v4611_v43 = vpop.f32.mrb[10].mxu1 }
 0x64d   : > { %v4615_v44 = vmul.f32 0.25, %v4611_v43  ;;  %v12842_v45 = vpop.f32.mrb[11].mxu1  ;;  %v11808_v43 = vld [vmem:[%s15555_s5 + $0x58] sm:$0xff] }
 0x64e   : > { %v7076_v45 = vsub.f32 %v11806_v21, %v6992_v32 }
 0x64f   : > { %v4616_v46 = vsel %vm2230_vm3, %v4615_v44, -inf }
 0x650   : > { %4617 = vmax.xlane.f32.xlu1 %v4616_v46 }
 0x654   : > { %2238 = vadd.xlane.f32.xlu1 %v2237_v47  ;;  %v6998_v47 = vand.u32 4294901760, %v11808_v43 }
 0x6dd   : > { %v4618_v48 = vpop.xlane.xlu1 %4617 }
 0x6de   : > { %v4619_v49 = vsub.f32 %v4615_v44, %v4618_v48  ;;  %v7069_v44 = vsub.f32 %v11805_v20, %v6989_v41 }
 0x6e0   : > { %v4620_v50 = vmul.f32 1.442695, %v4619_v49  ;;  %v7090_v49 = vsub.f32 %v11808_v43, %v6998_v47  ;;  %v13894_v4 = vpack.c.bf16 %v7076_v45, %v7069_v44  ;;  %v2692_v43 = vld [vmem:[%s15556_s6 + $0x8] sm:$0xff] }
 0x6e2   : > { %14352 = vpow2.f32 %v4620_v50  ;;  %v7070_v50 = vand.u32 4294901760, %v7069_v44 }
 0x6ec   : > { %v14353_v54 = vpop.eup %14352 }
 0x6ed   : > { %v4626_v56 = vsel %vm2230_vm3, %v14353_v54, 0  ;;  %v4622_v57 = vsel %vm2230_vm3, %v14353_v54, 0.0  ;;  %v13882_v54 = vpack.c.bf16 %v6992_v32, %v6989_v41  ;;  %v2239_v41 = vpop.xlane.xlu1 %2238 }
 0x6ee   : > { %v4694_v58 = vand.u32 4294901760, %v4626_v56  ;;  %4623 = vadd.xlane.f32.xlu0 %v4622_v57 }
 0x6f0   : > { %v4695_v60 = vsub.f32 %v4626_v56, %v4694_v58  ;;  %v7071_v56 = vsub.f32 %v7069_v44, %v7070_v50 }
 0x6f2   : > { %v4696_v62 = vand.u32 4294901760, %v4695_v60 }
 0x6f4   : > { %v4697_v0 = vsub.f32 %v4695_v60, %v4696_v62 }
 0x6f6   : > { %v4698_v40 = vand.u32 4294901760, %v4697_v0 }
 0x6f8   : > { %12846 = vmatmul.mubr.f32.vlgmr.msra.gmra.mrb[12].mxu1 %v4698_v40 }
 0x6f9   : > { %12849 = vmatpush3.msra.mxu1 %v4709_v1  ;;  %12850 = vmatprep.mubr.msk.f32.mxu1 %vm14431_vm1, %v14432_v22 }
 0x6fa   : > { %12853 = vmatprep.subr.mxu1 %v14432_v22 }
 0x700   : > { %12851 = vmatmul.mubr.f32.vlgmr.msra.gmra.mrb[12].mxu1 %v4694_v58 }
 0x701   : > { %12854 = vmatpush3.msra.mxu1 %v4706_v53  ;;  %12855 = vmatprep.mubr.msk.f32.mxu1 %vm14431_vm1, %v14432_v22  ;;  %v7077_v53 = vand.u32 4294901760, %v7076_v45 }
 0x702   : > { %12858 = vmatprep.subr.mxu1 %v14432_v22 }
 0x703   : > { %v7078_v57 = vsub.f32 %v7076_v45, %v7077_v53  ;;  %v13906_v6 = vpack.c.bf16 %v7077_v53, %v7070_v50 }
 0x705   : > { %v7079_v63 = vand.u32 4294901760, %v7078_v57 }
 0x708   : > { %12856 = vmatmul.mubr.f32.vlgmr.msra.gmra.mrb[12].mxu1 %v4695_v60 }
 0x709   : > { %12859 = vmatpush3.msra.mxu1 %v4629_v42  ;;  %12860 = vmatprep.mubr.msk.f32.mxu1 %vm14431_vm1, %v14432_v22 }
 0x70a   : > { %12863 = vmatprep.subr.mxu1 %v14432_v22 }
 0x710   : > { %12861 = vmatmul.mubr.f32.vlgmr.msra.gmra.mrb[12].mxu1 %v4696_v62  ;;  %v7072_v62 = vand.u32 4294901760, %v7071_v56 }
 0x711   : > { %12864 = vmatpush3.msra.mxu1 %v4707_v59  ;;  %12865 = vmatprep.mubr.msk.f32.mxu1 %vm14431_vm1, %v14432_v22  ;;  %v7091_v59 = vand.u32 4294901760, %v7090_v49 }
 0x712   : > { %12868 = vmatprep.subr.mxu1 %v14432_v22  ;;  %v13888_v1 = vpack.c.bf16 %v7079_v63, %v7072_v62 }
 0x713   : > { %v7092_v40 = vsub.f32 %v7090_v49, %v7091_v59 }
 0x715   : > { %v7093_v2 = vand.u32 4294901760, %v7092_v40 }
 0x718   : > { %12866 = vmatmul.mubr.f32.vlgmr.msra.gmra.mrb[12].mxu1 %v4694_v58 }
 0x719   : > { %12869 = vmatpush3.msra.mxu1 %v4629_v42  ;;  %12870 = vmatprep.mubr.msk.f32.mxu1 %vm14431_vm1, %v14432_v22  ;;  %v11807_v42 = vld [vmem:[%s15555_s5 + $0x50] sm:$0xff] }
 0x71a   : > { %13809 = vmatprep.subr.bf16.mxu1 %v14430_v12  ;;  %v6995_v46 = vand.u32 4294901760, %v11807_v42 }
 0x71c   : > { %v7083_v48 = vsub.f32 %v11807_v42, %v6995_v46  ;;  %v13885_v60 = vpack.c.bf16 %v6998_v47, %v6995_v46  ;;  %v2691_v42 = vld [vmem:[%s15556_s6] sm:$0xff]  ;;  %v5548_v46 = vand.u32 4294901760, %v2692_v43 }
 0x71d   : > { %v5545_v45 = vand.u32 4294901760, %v2691_v42 }
 0x71e   : > { %v13897_v5 = vpack.c.bf16 %v7090_v49, %v7083_v48  ;;  %v5630_v49 = vsub.f32 %v2692_v43, %v5548_v46 }
 0x720   : > { %12871 = vmatmul.mubr.f32.vlgmr.msra.gmra.mrb[12].mxu1 %v4694_v58  ;;  %v7084_v58 = vand.u32 4294901760, %v7083_v48  ;;  %v5631_v53 = vand.u32 4294901760, %v5630_v49 }
 0x721   : > { %13811 = vmatpush3.bf16.msra.mxu1 %v13810_v23  ;;  %12965 = vmatprep.mubr.msk.f32.mxu1 %vm14431_vm1, %v14432_v22 }
 0x722   : > { %13812 = vmatprep.subr.bf16.mxu1 %v14430_v12  ;;  %v7085_v0 = vsub.f32 %v7083_v48, %v7084_v58  ;;  %v13909_v7 = vpack.c.bf16 %v7091_v59, %v7084_v58  ;;  %v5623_v48 = vsub.f32 %v2691_v42, %v5545_v45  ;;  %v13792_v58 = vpack.c.bf16 %v5548_v46, %v5545_v45 }
 0x724   : > { %v7086_v19 = vand.u32 4294901760, %v7085_v0 }
 0x725   : > { %13814 = vmatpush3.bf16.msra.mxu1 %v13813_v27 }
 0x726   : > { %13815 = vmatprep.subr.bf16.mxu1 %v14430_v12  ;;  %v13891_v3 = vpack.c.bf16 %v7093_v2, %v7086_v19  ;;  %v13798_v2 = vpack.c.bf16 %v5630_v49, %v5623_v48 }
 0x728   : > { %12966 = vmatmul.mubr.f32.vlgmr.msra.gmra.mrb[14].mxu1 %v14612_v61 }
 0x729   : > { %13817 = vmatpush3.bf16.msra.mxu1 %v13816_v18  ;;  %12976 = vmatprep.mubr.msk.f32.mxu1 %vm14431_vm1, %v14432_v22 }
 0x72a   : > { %13818 = vmatprep.subr.bf16.mxu1 %v14430_v12 }
 0x72d   : > { %13820 = vmatpush3.bf16.msra.mxu1 %v13819_v35 }
 0x72e   : > { %13821 = vmatprep.subr.bf16.mxu1 %v14430_v12 }
 0x730   : > { %12977 = vmatmul.mubr.f32.vlgmr.msra.gmra.mrb[14].mxu1 %v14586_v51 }
 0x731   : > { %13823 = vmatpush3.bf16.msra.mxu1 %v13822_v36  ;;  %12987 = vmatprep.mubr.msk.f32.mxu1 %vm14431_vm1, %v14432_v22 }
 0x732   : > { %13824 = vmatprep.subr.bf16.mxu1 %v14430_v12 }
 0x735   : > { %13826 = vmatpush3.bf16.msra.mxu1 %v13825_v37 }
 0x736   : > { %13827 = vmatprep.subr.bf16.mxu1 %v14430_v12 }
 0x738   : > { %12988 = vmatmul.mubr.f32.vlgmr.msra.gmra.mrb[14].mxu1 %v14589_v52 }
 0x739   : > { %13829 = vmatpush3.bf16.msra.mxu1 %v13810_v23  ;;  %12998 = vmatprep.mubr.msk.f32.mxu1 %vm14431_vm1, %v14432_v22 }
 0x73a   : > { %13830 = vmatprep.subr.bf16.mxu1 %v14430_v12 }
 0x73d   : > { %13832 = vmatpush3.bf16.msra.mxu1 %v13813_v27 }
 0x73e   : > { %13833 = vmatprep.subr.bf16.mxu1 %v14430_v12 }
 0x740   : > { %12999 = vmatmul.mubr.f32.vlgmr.msra.gmra.mrb[14].mxu1 %v14598_v55 }
 0x741   : > { %13835 = vmatpush3.bf16.msra.mxu1 %v13834_v38  ;;  %13009 = vmatprep.mubr.msk.f32.mxu1 %vm14431_vm1, %v14432_v22 }
 0x742   : > { %13836 = vmatprep.subr.bf16.mxu1 %v14430_v12 }
 0x745   : > { %13838 = vmatpush3.bf16.msra.mxu1 %v13837_v39 }
 0x746   : > { %13839 = vmatprep.subr.bf16.mxu1 %v14430_v12 }
 0x748   : > { %13010 = vmatmul.mubr.f32.vlgmr.msra.gmra.mrb[14].mxu1 %v14586_v51 }
 0x749   : > { %13841 = vmatpush3.bf16.msra.mxu1 %v13810_v23  ;;  %13020 = vmatprep.mubr.msk.f32.mxu1 %vm14431_vm1, %v14432_v22  ;;  %v5162_v23 = vand.u32 4294901760, %v5161_v15 }
 0x74a   : > { %13842 = vmatprep.subr.bf16.mxu1 %v14430_v12 }
 0x74b   : > { %v5163_v11 = vsub.f32 %v5161_v15, %v5162_v23  ;;  %v13786_v31 = vpack.c.bf16 %v5169_v24, %v5162_v23  ;;  %v6508_v15 = vand.u32 4294901760, %v11804_v9 }
 0x74d   : > { %13844 = vmatpush3.bf16.msra.mxu1 %v13813_v27  ;;  %v5164_v26 = vand.u32 4294901760, %v5163_v11  ;;  %v5171_v27 = vand.u32 4294901760, %v5170_v25  ;;  %v6600_v23 = vsub.f32 %v11804_v9, %v6508_v15 }
 0x74e   : > { %13881 = vmatprep.subr.bf16.mxu1 %v14430_v12 }
 0x74f   : > { %v13777_v28 = vpack.c.bf16 %v5171_v27, %v5164_v26 }
 0x750   : > { %13021 = vmatmul.mubr.f32.vlgmr.msra.gmra.mrb[14].mxu1 %v14586_v51 }
 0x751   : > { %13883 = vmatpush3.bf16.msra.mxu1 %v13882_v54  ;;  %13097 = vmatprep.mubr.msk.f32.mxu1 %vm14431_vm1, %v14432_v22 }
 0x752   : > { %13884 = vmatprep.subr.bf16.mxu1 %v14430_v12 }
 0x755   : > { %13886 = vmatpush3.bf16.msra.mxu1 %v13885_v60 }
 0x756   : > { %13887 = vmatprep.subr.bf16.mxu1 %v14430_v12 }
 0x758   : > { %13098 = vmatmul.mubr.f32.vlgmr.msra.gmra.mrb[16].mxu1 %v14612_v61 }
 0x759   : > { %13889 = vmatpush3.bf16.msra.mxu1 %v13888_v1  ;;  %13108 = vmatprep.mubr.msk.f32.mxu1 %vm14431_vm1, %v14432_v22 }
 0x75a   : > { %13890 = vmatprep.subr.bf16.mxu1 %v14430_v12 }
 0x75d   : > { %13892 = vmatpush3.bf16.msra.mxu1 %v13891_v3 }
 0x75e   : > { %13893 = vmatprep.subr.bf16.mxu1 %v14430_v12 }
 0x760   : > { %13109 = vmatmul.mubr.f32.vlgmr.msra.gmra.mrb[16].mxu1 %v14586_v51 }
 0x761   : > { %13895 = vmatpush3.bf16.msra.mxu1 %v13894_v4  ;;  %13119 = vmatprep.mubr.msk.f32.mxu1 %vm14431_vm1, %v14432_v22  ;;  %v11801_v4 = vld [vmem:[%s15554_s4 + $0x40] sm:$0xff] }
 0x762   : > { %13896 = vmatprep.subr.bf16.mxu1 %v14430_v12 }
 0x765   : > { %13898 = vmatpush3.bf16.msra.mxu1 %v13897_v5  ;;  %v11802_v5 = vld [vmem:[%s15554_s4 + $0x48] sm:$0xff] }
 0x766   : > { %13899 = vmatprep.subr.bf16.mxu1 %v14430_v12 }
 0x768   : > { %13120 = vmatmul.mubr.f32.vlgmr.msra.gmra.mrb[16].mxu1 %v14589_v52 }
 0x769   : > { %13901 = vmatpush3.bf16.msra.mxu1 %v13882_v54  ;;  %13130 = vmatprep.mubr.msk.f32.mxu1 %vm14431_vm1, %v14432_v22 }
 0x76a   : > { %13902 = vmatprep.subr.bf16.mxu1 %v14430_v12 }
 0x76d   : > { %13904 = vmatpush3.bf16.msra.mxu1 %v13885_v60 }
 0x76e   : > { %13905 = vmatprep.subr.bf16.mxu1 %v14430_v12 }
 0x770   : > { %13131 = vmatmul.mubr.f32.vlgmr.msra.gmra.mrb[16].mxu1 %v14598_v55 }
 0x771   : > { %13907 = vmatpush3.bf16.msra.mxu1 %v13906_v6  ;;  %13141 = vmatprep.mubr.msk.f32.mxu1 %vm14431_vm1, %v14432_v22  ;;  %v6499_v6 = vand.u32 4294901760, %v11801_v4 }
 0x772   : > { %13908 = vmatprep.subr.bf16.mxu1 %v14430_v12 }
 0x773   : > { %v6579_v10 = vsub.f32 %v11801_v4, %v6499_v6 }
 0x775   : > { %13910 = vmatpush3.bf16.msra.mxu1 %v13909_v7  ;;  %v6502_v7 = vand.u32 4294901760, %v11802_v5  ;;  %v6580_v24 = vand.u32 4294901760, %v6579_v10 }
 0x776   : > { %13911 = vmatprep.subr.bf16.mxu1 %v14430_v12 }
 0x777   : > { %v6586_v13 = vsub.f32 %v11802_v5, %v6502_v7 }
 0x778   : > { %13142 = vmatmul.mubr.f32.vlgmr.msra.gmra.mrb[16].mxu1 %v14586_v51 }
 0x779   : > { %13913 = vmatpush3.bf16.msra.mxu1 %v13882_v54  ;;  %13152 = vmatprep.mubr.msk.f32.mxu1 %vm14431_vm1, %v14432_v22  ;;  %v6587_v11 = vand.u32 4294901760, %v6586_v13 }
 0x77a   : > { %13914 = vmatprep.subr.bf16.mxu1 %v14430_v12 }
 0x77b   : > { %v4624_v17 = vpop.xlane.xlu0 %4623  ;;  %v13870_v42 = vpack.c.bf16 %v6587_v11, %v6580_v24 }
 0x77c   : > { %14354 = vrcp.f32 %v4624_v17 }
 0x77d   : > { %13916 = vmatpush3.bf16.msra.mxu1 %v13885_v60  ;;  %14356 = vrcp.f32 %v2239_v41  ;;  %v5632_v60 = vsub.f32 %v5630_v49, %v5631_v53  ;;  %v13858_v41 = vpack.c.bf16 %v6586_v13, %v6579_v10 }
 0x77e   : > { %13185 = vmatprep.subr.mxu1 %v14432_v22 }
 0x77f   : > { %v5633_v0 = vand.u32 4294901760, %v5632_v60 }
 0x780   : > { %13153 = vmatmul.mubr.f32.vlgmr.msra.gmra.mrb[16].mxu1 %v14586_v51 }
 0x781   : > { %13187 = vmatprep.mubr.msk.f32.mxu1 %vm14431_vm1, %v14432_v22 }
 0x786   : > { %v14355_v18 = vpop.eup %14354 }
 0x787   : > { %v14357_v32 = vpop.eup %14356 }
 0x788   : > { %v2690_v44 = vmul.f32 %v14357_v32, %v15006_v29  ;;  %v5624_v29 = vand.u32 4294901760, %v5623_v48 }
 0x78a   : > { %v5542_v47 = vsel %vm1776_vm2, %v2690_v44, 0  ;;  %v5625_v59 = vsub.f32 %v5623_v48, %v5624_v29  ;;  %v13804_v3 = vpack.c.bf16 %v5631_v53, %v5624_v29 }
 0x78b   : > { %v15166_v50 = vand.u32 4294901760, %v5542_v47 }
 0x78c   : > { %v5626_v63 = vand.u32 4294901760, %v5625_v59 }
 0x78d   : > { %v5612_v56 = vsub.f32 %v5542_v47, %v15166_v50 }
 0x78e   : > { %v13795_v1 = vpack.c.bf16 %v5633_v0, %v5626_v63 }
 0x78f   : > { %v5613_v62 = vand.u32 4294901760, %v5612_v56 }
 0x791   : > { %v5614_v40 = vsub.f32 %v5612_v56, %v5613_v62 }
 0x793   : > { %v5615_v19 = vand.u32 4294901760, %v5614_v40 }
 0x7f3   : > { %v5070_v33 = vpop.f32.mrb[12].mxu1 }
 0x7f4   : > { %v5075_v34 = vmul.f32 %v14355_v18, %v5070_v33  ;;  %v12872_v35 = vpop.f32.mrb[13].mxu1  ;;  %v6601_v18 = vand.u32 4294901760, %v6600_v23 }
 0x7f6   : > { %v5080_v36 = vsel %vm1776_vm2, %v5075_v34, 0 }
 0x7f7   : > { %v5149_v37 = vand.u32 4294901760, %v5080_v36 }
 0x7f9   : > { %v5150_v38 = vsub.f32 %v5080_v36, %v5149_v37 }
 0x7fb   : > { %v5151_v20 = vand.u32 4294901760, %v5150_v38 }
 0x7fd   : > { %v5152_v21 = vsub.f32 %v5150_v38, %v5151_v20 }
 0x7ff   : > { %v5153_v39 = vand.u32 4294901760, %v5152_v21 }
 0x801   : > { %12878 = vmatmul.mubr.f32.vlgmr.msra.gmra.mrb[8].mxu0 %v5153_v39 }
 0x802   : > { %13778 = vmatpush3.bf16.msra.mxu0 %v13777_v28  ;;  %12884 = vmatprep.mubr.msk.f32.mxu0 %vm14431_vm1, %v14432_v22  ;;  %v13846_v28 = vpack.c.bf16 %v6502_v7, %v6499_v6 }
 0x803   : > { %13779 = vmatprep.subr.bf16.mxu0 %v14430_v12 }
 0x809   : > { %12885 = vmatmul.mubr.f32.vlgmr.msra.gmra.mrb[8].mxu0 %v5149_v37 }
 0x80a   : > { %13781 = vmatpush3.bf16.msra.mxu0 %v13780_v30  ;;  %12891 = vmatprep.mubr.msk.f32.mxu0 %vm14431_vm1, %v14432_v22  ;;  %v6581_v30 = vsub.f32 %v6579_v10, %v6580_v24 }
 0x80b   : > { %13782 = vmatprep.subr.bf16.mxu0 %v14430_v12 }
 0x80c   : > { %v6582_v34 = vand.u32 4294901760, %v6581_v30 }
 0x811   : > { %12892 = vmatmul.mubr.f32.vlgmr.msra.gmra.mrb[8].mxu0 %v5150_v38 }
 0x812   : > { %13784 = vmatpush3.bf16.msra.mxu0 %v13774_v14  ;;  %12898 = vmatprep.mubr.msk.f32.mxu0 %vm14431_vm1, %v14432_v22 }
 0x813   : > { %13785 = vmatprep.subr.bf16.mxu0 %v14430_v12 }
 0x819   : > { %12899 = vmatmul.mubr.f32.vlgmr.msra.gmra.mrb[8].mxu0 %v5151_v20 }
 0x81a   : > { %13787 = vmatpush3.bf16.msra.mxu0 %v13786_v31  ;;  %12905 = vmatprep.mubr.msk.f32.mxu0 %vm14431_vm1, %v14432_v22  ;;  %v6588_v31 = vsub.f32 %v6586_v13, %v6587_v11 }
 0x81b   : > { %13788 = vmatprep.subr.bf16.mxu0 %v14430_v12 }
 0x81c   : > { %v6589_v35 = vand.u32 4294901760, %v6588_v31 }
 0x81e   : > { %v13852_v38 = vpack.c.bf16 %v6589_v35, %v6582_v34 }
 0x821   : > { %12906 = vmatmul.mubr.f32.vlgmr.msra.gmra.mrb[8].mxu0 %v5149_v37 }
 0x822   : > { %13790 = vmatpush3.bf16.msra.mxu0 %v13774_v14  ;;  %12912 = vmatprep.mubr.msk.f32.mxu0 %vm14431_vm1, %v14432_v22  ;;  %v6505_v14 = vand.u32 4294901760, %v11803_v8 }
 0x823   : > { %v15170_v54 = vpop.f32.mrb[14].mxu1  ;;  %13791 = vmatprep.subr.bf16.mxu0 %v14430_v12 }
 0x824   : > { %v13022_v57 = vpop.f32.mrb[15].mxu1  ;;  %v6593_v16 = vsub.f32 %v11803_v8, %v6505_v14  ;;  %v13849_v33 = vpack.c.bf16 %v6508_v15, %v6505_v14  ;;  %v7474_v44 = vsel %vm1776_vm2, %v15170_v54, 0 }
 0x825   : > { %v7545_v45 = vand.u32 4294901760, %v7474_v44 }
 0x826   : > { %v6594_v17 = vand.u32 4294901760, %v6593_v16  ;;  %v13861_v32 = vpack.c.bf16 %v6600_v23, %v6593_v16 }
 0x827   : > { %v7546_v46 = vsub.f32 %v7474_v44, %v7545_v45 }
 0x828   : > { %v6595_v36 = vsub.f32 %v6593_v16, %v6594_v17  ;;  %v13873_v43 = vpack.c.bf16 %v6601_v18, %v6594_v17  ;;  %v11811_v16 = vld [vmem:[%s15553_s3 + $0x60] sm:$0xff] }
 0x829   : > { %12913 = vmatmul.mubr.f32.vlgmr.msra.gmra.mrb[8].mxu0 %v5149_v37  ;;  %v6602_v37 = vsub.f32 %v6600_v23, %v6601_v18  ;;  %v7547_v47 = vand.u32 4294901760, %v7546_v46  ;;  %v11812_v23 = vld [vmem:[%s15553_s3 + $0x68] sm:$0xff]  ;;  %v8858_v24 = vand.u32 4294901760, %v11811_v16 }
 0x82a   : > { %13793 = vmatpush3.bf16.msra.mxu0 %v13792_v58  ;;  %12919 = vmatprep.mubr.msk.f32.mxu0 %vm14431_vm1, %v14432_v22  ;;  %v6596_v20 = vand.u32 4294901760, %v6595_v36  ;;  %v8861_v11 = vand.u32 4294901760, %v11812_v23 }
 0x82b   : > { %13794 = vmatprep.subr.bf16.mxu0 %v14430_v12  ;;  %v6603_v21 = vand.u32 4294901760, %v6602_v37  ;;  %v7548_v49 = vsub.f32 %v7546_v46, %v7547_v47 }
 0x82c   : > { %v8945_v30 = vsub.f32 %v11812_v23, %v8861_v11  ;;  %v13936_v36 = vpack.c.bf16 %v8861_v11, %v8858_v24 }
 0x82d   : > { %v13855_v39 = vpack.c.bf16 %v6603_v21, %v6596_v20  ;;  %v7549_v57 = vand.u32 4294901760, %v7548_v49 }
 0x82e   : > { %v8946_v35 = vand.u32 4294901760, %v8945_v30 }
 0x831   : > { %12920 = vmatmul.mubr.f32.vlgmr.msra.gmra.mrb[8].mxu0 %v5615_v19 }
 0x832   : > { %13796 = vmatpush3.bf16.msra.mxu0 %v13795_v1  ;;  %12926 = vmatprep.mubr.msk.f32.mxu0 %vm14431_vm1, %v14432_v22 }
 0x833   : > { %13797 = vmatprep.subr.bf16.mxu0 %v14430_v12 }
 0x839   : > { %12927 = vmatmul.mubr.f32.vlgmr.msra.gmra.mrb[8].mxu0 %v15166_v50 }
 0x83a   : > { %13799 = vmatpush3.bf16.msra.mxu0 %v13798_v2  ;;  %12933 = vmatprep.mubr.msk.f32.mxu0 %vm14431_vm1, %v14432_v22 }
 0x83b   : > { %13800 = vmatprep.subr.bf16.mxu0 %v14430_v12 }
 0x841   : > { %12934 = vmatmul.mubr.f32.vlgmr.msra.gmra.mrb[8].mxu0 %v5612_v56 }
 0x842   : > { %13802 = vmatpush3.bf16.msra.mxu0 %v13792_v58  ;;  %12940 = vmatprep.mubr.msk.f32.mxu0 %vm14431_vm1, %v14432_v22 }
 0x843   : > { %13803 = vmatprep.subr.bf16.mxu0 %v14430_v12 }
 0x849   : > { %12941 = vmatmul.mubr.f32.vlgmr.msra.gmra.mrb[8].mxu0 %v5613_v62 }
 0x84a   : > { %13805 = vmatpush3.bf16.msra.mxu0 %v13804_v3  ;;  %12947 = vmatprep.mubr.msk.f32.mxu0 %vm14431_vm1, %v14432_v22 }
 0x84b   : > { %13806 = vmatprep.subr.bf16.mxu0 %v14430_v12 }
 0x851   : > { %12948 = vmatmul.mubr.f32.vlgmr.msra.gmra.mrb[8].mxu0 %v15166_v50 }
 0x852   : > { %13808 = vmatpush3.bf16.msra.mxu0 %v13792_v58  ;;  %12954 = vmatprep.mubr.msk.f32.mxu0 %vm14431_vm1, %v14432_v22 }
 0x853   : > { %v15205_v25 = vpop.f32.mrb[16].mxu1  ;;  %13845 = vmatprep.subr.bf16.mxu0 %v14430_v12 }
 0x854   : > { %v15209_v26 = vand.u32 4294901760, %v15205_v25  ;;  %v13154_v27 = vpop.f32.mrb[17].mxu1 }
 0x855   : > { %v11814_v27 = vld [vmem:[%s15553_s3 + $0x78] sm:$0xff] }
 0x856   : > { %13186 = vmatpush3.msra.mxu1 %v15209_v26  ;;  %v8016_v2 = vsub.f32 %v15205_v25, %v15209_v26  ;;  %v11813_v25 = vld [vmem:[%s15553_s3 + $0x70] sm:$0xff]  ;;  %v8867_v17 = vand.u32 4294901760, %v11814_v27 }
 0x857   : > { %13190 = vmatprep.subr.mxu1 %v14432_v22  ;;  %v8864_v31 = vand.u32 4294901760, %v11813_v25 }
 0x858   : > { %v8017_v7 = vand.u32 4294901760, %v8016_v2 }
 0x859   : > { %12955 = vmatmul.mubr.f32.vlgmr.msra.gmra.mrb[8].mxu0 %v15166_v50  ;;  %v8952_v18 = vsub.f32 %v11813_v25, %v8864_v31 }
 0x85a   : > { %13847 = vmatpush3.bf16.msra.mxu0 %v13846_v28  ;;  %13031 = vmatprep.mubr.msk.f32.mxu0 %vm14431_vm1, %v14432_v22  ;;  %v8018_v10 = vsub.f32 %v8016_v2, %v8017_v7 }
 0x85b   : > { %13848 = vmatprep.subr.bf16.mxu0 %v14430_v12  ;;  %v8953_v20 = vand.u32 4294901760, %v8952_v18 }
 0x85c   : > { %v8019_v15 = vand.u32 4294901760, %v8018_v10 }
 0x85e   : > { %13850 = vmatpush3.bf16.msra.mxu0 %v13849_v33 }
 0x85f   : > { %13851 = vmatprep.subr.bf16.mxu0 %v14430_v12 }
 0x861   : > { %13032 = vmatmul.mubr.f32.vlgmr.msra.gmra.mrb[10].mxu0 %v14612_v61 }
 0x862   : > { %13853 = vmatpush3.bf16.msra.mxu0 %v13852_v38  ;;  %13042 = vmatprep.mubr.msk.f32.mxu0 %vm14431_vm1, %v14432_v22  ;;  %v8947_v38 = vsub.f32 %v8945_v30, %v8946_v35 }
 0x863   : > { %13854 = vmatprep.subr.bf16.mxu0 %v14430_v12 }
 0x866   : > { %13856 = vmatpush3.bf16.msra.mxu0 %v13855_v39  ;;  %v13939_v39 = vpack.c.bf16 %v8867_v17, %v8864_v31 }
 0x867   : > { %13857 = vmatprep.subr.bf16.mxu0 %v14430_v12 }
 0x869   : > { %13043 = vmatmul.mubr.f32.vlgmr.msra.gmra.mrb[10].mxu0 %v14586_v51 }
 0x86a   : > { %13859 = vmatpush3.bf16.msra.mxu0 %v13858_v41  ;;  %13053 = vmatprep.mubr.msk.f32.mxu0 %vm14431_vm1, %v14432_v22  ;;  %v8948_v41 = vand.u32 4294901760, %v8947_v38 }
 0x86b   : > { %13860 = vmatprep.subr.bf16.mxu0 %v14430_v12 }
 0x86e   : > { %13862 = vmatpush3.bf16.msra.mxu0 %v13861_v32  ;;  %v8954_v32 = vsub.f32 %v8952_v18, %v8953_v20 }
 0x86f   : > { %13863 = vmatprep.subr.bf16.mxu0 %v14430_v12 }
 0x870   : > { %v8955_v44 = vand.u32 4294901760, %v8954_v32 }
 0x871   : > { %13054 = vmatmul.mubr.f32.vlgmr.msra.gmra.mrb[10].mxu0 %v14589_v52 }
 0x872   : > { %13865 = vmatpush3.bf16.msra.mxu0 %v13846_v28  ;;  %13064 = vmatprep.mubr.msk.f32.mxu0 %vm14431_vm1, %v14432_v22 }
 0x873   : > { %13866 = vmatprep.subr.bf16.mxu0 %v14430_v12 }
 0x876   : > { %13868 = vmatpush3.bf16.msra.mxu0 %v13849_v33 }
 0x877   : > { %13869 = vmatprep.subr.bf16.mxu0 %v14430_v12 }
 0x879   : > { %13065 = vmatmul.mubr.f32.vlgmr.msra.gmra.mrb[10].mxu0 %v14598_v55 }
 0x87a   : > { %13871 = vmatpush3.bf16.msra.mxu0 %v13870_v42  ;;  %13075 = vmatprep.mubr.msk.f32.mxu0 %vm14431_vm1, %v14432_v22 }
 0x87b   : > { %13872 = vmatprep.subr.bf16.mxu0 %v14430_v12 }
 0x87e   : > { %13874 = vmatpush3.bf16.msra.mxu0 %v13873_v43 }
 0x87f   : > { %13875 = vmatprep.subr.bf16.mxu0 %v14430_v12 }
 0x881   : > { %13076 = vmatmul.mubr.f32.vlgmr.msra.gmra.mrb[10].mxu0 %v14586_v51 }
 0x882   : > { %13877 = vmatpush3.bf16.msra.mxu0 %v13846_v28  ;;  %13086 = vmatprep.mubr.msk.f32.mxu0 %vm14431_vm1, %v14432_v22  ;;  %v8938_v28 = vsub.f32 %v11811_v16, %v8858_v24 }
 0x883   : > { %13878 = vmatprep.subr.bf16.mxu0 %v14430_v12 }
 0x884   : > { %v8939_v34 = vand.u32 4294901760, %v8938_v28 }
 0x886   : > { %13880 = vmatpush3.bf16.msra.mxu0 %v13849_v33  ;;  %v8959_v33 = vsub.f32 %v11814_v27, %v8867_v17  ;;  %v8940_v37 = vsub.f32 %v8938_v28, %v8939_v34  ;;  %v13960_v49 = vpack.c.bf16 %v8946_v35, %v8939_v34 }
 0x887   : > { %13155 = vmatprep.subr.mxu0 %v14432_v22 }
 0x888   : > { %v8960_v21 = vand.u32 4294901760, %v8959_v33 }
 0x889   : > { %13087 = vmatmul.mubr.f32.vlgmr.msra.gmra.mrb[10].mxu0 %v14586_v51 }
 0x88a   : > { %13157 = vmatprep.mubr.msk.f32.mxu0 %vm14431_vm1, %v14432_v22  ;;  %v8961_v42 = vsub.f32 %v8959_v33, %v8960_v21 }
 0x95c   : > { %v6979_v48 = vpop.f32.mrb[10].mxu0 }
 0x95d   : > { %v7477_v50 = vsel %vm1776_vm2, %v6979_v48, 0  ;;  %v13088_v29 = vpop.f32.mrb[11].mxu0  ;;  %v13951_v48 = vpack.c.bf16 %v8959_v33, %v8952_v18 }
 0x95e   : > { %v7480_v53 = vand.u32 4294901760, %v7477_v50  ;;  %v11820_v29 = vld [vmem:[%s15555_s5 + $0x68] sm:$0xff] }
 0x960   : > { %v7557_v56 = vsub.f32 %v7477_v50, %v7480_v53  ;;  %13156 = vmatpush3.xpose.msra.mxu0 %v7480_v53  ;;  %v11819_v50 = vld [vmem:[%s15555_s5 + $0x60] sm:$0xff] }
 0x961   : > { %13160 = vmatprep.subr.mxu0 %v14432_v22 }
 0x962   : > { %v7558_v58 = vand.u32 4294901760, %v7557_v56 }
 0x963   : > { %13158 = vmatmul.mubr.f32.vlgmr.msra.gmra.mrb[12].mxu0 %v7549_v57  ;;  %v9841_v57 = vand.u32 4294901760, %v11820_v29 }
 0x964   : > { %v7559_v59 = vsub.f32 %v7557_v56, %v7558_v58  ;;  %13162 = vmatprep.mubr.msk.f32.mxu0 %vm14431_vm1, %v14432_v22 }
 0x966   : > { %v7560_v54 = vand.u32 4294901760, %v7559_v59  ;;  %v11822_v59 = vld [vmem:[%s15555_s5 + $0x78] sm:$0xff] }
 0x968   : > { %13161 = vmatpush3.xpose.msra.mxu0 %v7560_v54 }
 0x969   : > { %13165 = vmatprep.subr.mxu0 %v14432_v22 }
 0x96b   : > { %13163 = vmatmul.mubr.f32.vlgmr.msra.gmra.mrb[12].mxu0 %v7545_v45 }
 0x96c   : > { %13166 = vmatpush3.xpose.msra.mxu0 %v7557_v56  ;;  %13167 = vmatprep.mubr.msk.f32.mxu0 %vm14431_vm1, %v14432_v22  ;;  %v9838_v56 = vand.u32 4294901760, %v11819_v50 }
 0x96d   : > { %13170 = vmatprep.subr.mxu0 %v14432_v22 }
 0x96e   : > { %v9918_v54 = vsub.f32 %v11819_v50, %v9838_v56 }
 0x973   : > { %13168 = vmatmul.mubr.f32.vlgmr.msra.gmra.mrb[12].mxu0 %v7546_v46 }
 0x974   : > { %13171 = vmatpush3.xpose.msra.mxu0 %v7480_v53  ;;  %13172 = vmatprep.mubr.msk.f32.mxu0 %vm14431_vm1, %v14432_v22 }
 0x975   : > { %13175 = vmatprep.subr.mxu0 %v14432_v22 }
 0x97b   : > { %13173 = vmatmul.mubr.f32.vlgmr.msra.gmra.mrb[12].mxu0 %v7547_v47  ;;  %v13948_v47 = vpack.c.bf16 %v8945_v30, %v8938_v28  ;;  %v11809_v28 = vld [vmem:[%s15556_s6 + $0x20] sm:$0xff]  ;;  %v11810_v30 = vld [vmem:[%s15556_s6 + $0x28] sm:$0xff] }
 0x97c   : > { %13176 = vmatpush3.xpose.msra.mxu0 %v7558_v58  ;;  %13177 = vmatprep.mubr.msk.f32.mxu0 %vm14431_vm1, %v14432_v22  ;;  %v11821_v58 = vld [vmem:[%s15555_s5 + $0x70] sm:$0xff]  ;;  %v8393_v31 = vand.u32 4294901760, %v11809_v28  ;;  %v8396_v17 = vand.u32 4294901760, %v11810_v30 }
 0x97d   : > { %13180 = vmatprep.subr.mxu0 %v14432_v22 }
 0x97e   : > { %v13918_v18 = vpack.c.bf16 %v8396_v17, %v8393_v31  ;;  %v8471_v33 = vsub.f32 %v11809_v28, %v8393_v31  ;;  %v8478_v34 = vsub.f32 %v11810_v30, %v8396_v17 }
 0x980   : > { %v8472_v35 = vand.u32 4294901760, %v8471_v33 }
 0x983   : > { %13178 = vmatmul.mubr.f32.vlgmr.msra.gmra.mrb[12].mxu0 %v7545_v45 }
 0x984   : > { %13181 = vmatpush3.xpose.msra.mxu0 %v7480_v53  ;;  %13182 = vmatprep.mubr.msk.f32.mxu0 %vm14431_vm1, %v14432_v22  ;;  %v13963_v53 = vpack.c.bf16 %v8960_v21, %v8953_v20 }
 0x985   : > { %13917 = vmatprep.subr.bf16.mxu0 %v14430_v12 }
 0x98b   : > { %13183 = vmatmul.mubr.f32.vlgmr.msra.gmra.mrb[12].mxu0 %v7545_v45  ;;  %v8962_v45 = vand.u32 4294901760, %v8961_v42 }
 0x98c   : > { %13219 = vmatprep.mubr.msk.f32.mxu0 %vm14431_vm1, %v14432_v22  ;;  %13919 = vmatpush3.bf16.msra.mxu0 %v13918_v18 }
 0x98d   : > { %v13945_v46 = vpack.c.bf16 %v8962_v45, %v8955_v44  ;;  %13920 = vmatprep.subr.bf16.mxu0 %v14430_v12 }
 0xa5e   : > { %v7921_v60 = vpop.f32.mrb[12].mxu0 }
 0xa5f   : > { %v7925_v62 = vmul.f32 0.25, %v7921_v60  ;;  %v13184_v63 = vpop.f32.mrb[13].mxu0  ;;  %v9925_v60 = vsub.f32 %v11820_v29, %v9841_v57 }
 0xa60   : > { %v9847_v63 = vand.u32 4294901760, %v11822_v59 }
 0xa61   : > { %v7926_v0 = vsel %vm2230_vm3, %v7925_v62, -inf  ;;  %v14020_v24 = vpack.c.bf16 %v9925_v60, %v9918_v54 }
 0xa62   : > { %7927 = vmax.xlane.f32.xlu0 %v7926_v0 }
 0xaef   : > { %v7928_v40 = vpop.xlane.xlu0 %7927 }
 0xaf0   : > { %v7929_v1 = vsub.f32 %v7925_v62, %v7928_v40  ;;  %v9844_v62 = vand.u32 4294901760, %v11821_v58  ;;  %v9939_v40 = vsub.f32 %v11822_v59, %v9847_v63  ;;  %v11817_v59 = vld [vmem:[%s15554_s4 + $0x70] sm:$0xff] }
 0xaf2   : > { %v7930_v19 = vmul.f32 1.442695, %v7929_v1  ;;  %v9932_v0 = vsub.f32 %v11821_v58, %v9844_v62  ;;  %v9919_v1 = vand.u32 4294901760, %v9918_v54 }
 0xaf4   : > { %14358 = vpow2.f32 %v7930_v19  ;;  %v9926_v19 = vand.u32 4294901760, %v9925_v60  ;;  %v14023_v11 = vpack.c.bf16 %v9939_v40, %v9932_v0 }
 0xaf6   : > { %v14032_v25 = vpack.c.bf16 %v9926_v19, %v9919_v1 }
 0xafe   : > { %v14359_v3 = vpop.eup %14358 }
 0xaff   : > { %v7936_v4 = vsel %vm2230_vm3, %v14359_v3, 0  ;;  %v7932_v5 = vsel %vm2230_vm3, %v14359_v3, 0.0  ;;  %v9920_v3 = vsub.f32 %v9918_v54, %v9919_v1  ;;  %v11818_v54 = vld [vmem:[%s15554_s4 + $0x78] sm:$0xff] }
 0xb00   : > { %v8004_v6 = vand.u32 4294901760, %v7936_v4  ;;  %7933 = vadd.xlane.f32.xlu1 %v7932_v5  ;;  %v9933_v5 = vand.u32 4294901760, %v9932_v0 }
 0xb02   : > { %v8005_v8 = vsub.f32 %v7936_v4, %v8004_v6  ;;  %v9927_v4 = vsub.f32 %v9925_v60, %v9926_v19  ;;  %v9934_v10 = vsub.f32 %v9932_v0, %v9933_v5  ;;  %v9357_v0 = vand.u32 4294901760, %v11818_v54 }
 0xb04   : > { %v8006_v9 = vand.u32 4294901760, %v8005_v8  ;;  %v9449_v1 = vsub.f32 %v11818_v54, %v9357_v0 }
 0xb06   : > { %v8007_v13 = vsub.f32 %v8005_v8, %v8006_v9 }
 0xb08   : > { %v8008_v14 = vand.u32 4294901760, %v8007_v13 }
 0xb0a   : > { %13188 = vmatmul.mubr.f32.vlgmr.msra.gmra.mrb[18].mxu1 %v8008_v14 }
 0xb0b   : > { %13191 = vmatpush3.msra.mxu1 %v8019_v15  ;;  %13192 = vmatprep.mubr.msk.f32.mxu1 %vm14431_vm1, %v14432_v22  ;;  %v9935_v15 = vand.u32 4294901760, %v9934_v10 }
 0xb0c   : > { %13195 = vmatprep.subr.mxu1 %v14432_v22 }
 0xb12   : > { %13193 = vmatmul.mubr.f32.vlgmr.msra.gmra.mrb[18].mxu1 %v8004_v6 }
 0xb13   : > { %13196 = vmatpush3.msra.mxu1 %v8016_v2  ;;  %13197 = vmatprep.mubr.msk.f32.mxu1 %vm14431_vm1, %v14432_v22  ;;  %v14008_v2 = vpack.c.bf16 %v9841_v57, %v9838_v56  ;;  %v11816_v56 = vld [vmem:[%s15554_s4 + $0x68] sm:$0xff] }
 0xb14   : > { %13200 = vmatprep.subr.mxu1 %v14432_v22  ;;  %v9351_v58 = vand.u32 4294901760, %v11816_v56 }
 0xb1a   : > { %13198 = vmatmul.mubr.f32.vlgmr.msra.gmra.mrb[18].mxu1 %v8005_v8  ;;  %v9921_v8 = vand.u32 4294901760, %v9920_v3 }
 0xb1b   : > { %13201 = vmatpush3.msra.mxu1 %v15209_v26  ;;  %13202 = vmatprep.mubr.msk.f32.mxu1 %vm14431_vm1, %v14432_v22 }
 0xb1c   : > { %13205 = vmatprep.subr.mxu1 %v14432_v22 }
 0xb22   : > { %13203 = vmatmul.mubr.f32.vlgmr.msra.gmra.mrb[18].mxu1 %v8006_v9  ;;  %v9928_v9 = vand.u32 4294901760, %v9927_v4 }
 0xb23   : > { %13206 = vmatpush3.msra.mxu1 %v8017_v7  ;;  %13207 = vmatprep.mubr.msk.f32.mxu1 %vm14431_vm1, %v14432_v22  ;;  %v14011_v7 = vpack.c.bf16 %v9847_v63, %v9844_v62  ;;  %v9435_v62 = vsub.f32 %v11816_v56, %v9351_v58  ;;  %v9354_v63 = vand.u32 4294901760, %v11817_v59 }
 0xb24   : > { %13210 = vmatprep.subr.mxu1 %v14432_v22  ;;  %v14014_v14 = vpack.c.bf16 %v9928_v9, %v9921_v8  ;;  %v9450_v9 = vand.u32 4294901760, %v9449_v1 }
 0xb25   : > { %v13975_v10 = vpack.c.bf16 %v9357_v0, %v9354_v63  ;;  %v11824_v0 = vld [vmem:[%s15556_s6 + $0x38] sm:$0xff] }
 0xb2a   : > { %13208 = vmatmul.mubr.f32.vlgmr.msra.gmra.mrb[18].mxu1 %v8004_v6 }
 0xb2b   : > { %13211 = vmatpush3.msra.mxu1 %v15209_v26  ;;  %13212 = vmatprep.mubr.msk.f32.mxu1 %vm14431_vm1, %v14432_v22  ;;  %v8941_v26 = vand.u32 4294901760, %v8940_v37  ;;  %v8473_v37 = vsub.f32 %v8471_v33, %v8472_v35 }
 0xb2c   : > { %13935 = vmatprep.subr.bf16.mxu1 %v14430_v12 }
 0xb2d   : > { %v13942_v43 = vpack.c.bf16 %v8948_v41, %v8941_v26  ;;  %v8474_v20 = vand.u32 4294901760, %v8473_v37  ;;  %v13924_v26 = vpack.c.bf16 %v8478_v34, %v8471_v33 }
 0xb32   : > { %13213 = vmatmul.mubr.f32.vlgmr.msra.gmra.mrb[18].mxu1 %v8004_v6  ;;  %v9940_v6 = vand.u32 4294901760, %v9939_v40 }
 0xb33   : > { %13937 = vmatpush3.bf16.msra.mxu1 %v13936_v36  ;;  %13265 = vmatprep.mubr.msk.f32.mxu1 %vm14431_vm1, %v14432_v22 }
 0xb34   : > { %13938 = vmatprep.subr.bf16.mxu1 %v14430_v12  ;;  %v9941_v13 = vsub.f32 %v9939_v40, %v9940_v6  ;;  %v14035_v27 = vpack.c.bf16 %v9940_v6, %v9933_v5  ;;  %v9442_v40 = vsub.f32 %v11817_v59, %v9354_v63  ;;  %v11823_v63 = vld [vmem:[%s15556_s6 + $0x30] sm:$0xff] }
 0xb36   : > { %v9942_v16 = vand.u32 4294901760, %v9941_v13  ;;  %v9443_v8 = vand.u32 4294901760, %v9442_v40  ;;  %v13987_v28 = vpack.c.bf16 %v9449_v1, %v9442_v40 }
 0xb37   : > { %13940 = vmatpush3.bf16.msra.mxu1 %v13939_v39 }
 0xb38   : > { %13941 = vmatprep.subr.bf16.mxu1 %v14430_v12  ;;  %v14017_v23 = vpack.c.bf16 %v9942_v16, %v9935_v15  ;;  %v9444_v15 = vsub.f32 %v9442_v40, %v9443_v8  ;;  %v9451_v16 = vsub.f32 %v9449_v1, %v9450_v9  ;;  %v13999_v30 = vpack.c.bf16 %v9450_v9, %v9443_v8 }
 0xb39   : > { %v11242_v40 = vand.u32 4294901760, %v11823_v63  ;;  %v11245_v1 = vand.u32 4294901760, %v11824_v0 }
 0xb3a   : > { %13266 = vmatmul.mubr.f32.vlgmr.msra.gmra.mrb[20].mxu1 %v14612_v61 }
 0xb3b   : > { %13943 = vmatpush3.bf16.msra.mxu1 %v13942_v43  ;;  %13276 = vmatprep.mubr.msk.f32.mxu1 %vm14431_vm1, %v14432_v22 }
 0xb3c   : > { %13944 = vmatprep.subr.bf16.mxu1 %v14430_v12 }
 0xb3f   : > { %13946 = vmatpush3.bf16.msra.mxu1 %v13945_v46 }
 0xb40   : > { %13947 = vmatprep.subr.bf16.mxu1 %v14430_v12 }
 0xb42   : > { %13277 = vmatmul.mubr.f32.vlgmr.msra.gmra.mrb[20].mxu1 %v14586_v51 }
 0xb43   : > { %13949 = vmatpush3.bf16.msra.mxu1 %v13948_v47  ;;  %13287 = vmatprep.mubr.msk.f32.mxu1 %vm14431_vm1, %v14432_v22 }
 0xb44   : > { %13950 = vmatprep.subr.bf16.mxu1 %v14430_v12 }
 0xb47   : > { %13952 = vmatpush3.bf16.msra.mxu1 %v13951_v48 }
 0xb48   : > { %13953 = vmatprep.subr.bf16.mxu1 %v14430_v12 }
 0xb4a   : > { %13288 = vmatmul.mubr.f32.vlgmr.msra.gmra.mrb[20].mxu1 %v14589_v52 }
 0xb4b   : > { %13955 = vmatpush3.bf16.msra.mxu1 %v13936_v36  ;;  %13298 = vmatprep.mubr.msk.f32.mxu1 %vm14431_vm1, %v14432_v22 }
 0xb4c   : > { %13956 = vmatprep.subr.bf16.mxu1 %v14430_v12 }
 0xb4f   : > { %13958 = vmatpush3.bf16.msra.mxu1 %v13939_v39 }
 0xb50   : > { %13959 = vmatprep.subr.bf16.mxu1 %v14430_v12 }
 0xb52   : > { %13299 = vmatmul.mubr.f32.vlgmr.msra.gmra.mrb[20].mxu1 %v14598_v55 }
 0xb53   : > { %13961 = vmatpush3.bf16.msra.mxu1 %v13960_v49  ;;  %13309 = vmatprep.mubr.msk.f32.mxu1 %vm14431_vm1, %v14432_v22 }
 0xb54   : > { %13962 = vmatprep.subr.bf16.mxu1 %v14430_v12 }
 0xb57   : > { %13964 = vmatpush3.bf16.msra.mxu1 %v13963_v53  ;;  %v11815_v53 = vld [vmem:[%s15554_s4 + $0x60] sm:$0xff] }
 0xb58   : > { %13965 = vmatprep.subr.bf16.mxu1 %v14430_v12  ;;  %v9348_v57 = vand.u32 4294901760, %v11815_v53 }
 0xb5a   : > { %13310 = vmatmul.mubr.f32.vlgmr.msra.gmra.mrb[20].mxu1 %v14586_v51  ;;  %v9428_v60 = vsub.f32 %v11815_v53, %v9348_v57  ;;  %v13972_v5 = vpack.c.bf16 %v9351_v58, %v9348_v57 }
 0xb5b   : > { %13967 = vmatpush3.bf16.msra.mxu1 %v13936_v36  ;;  %13320 = vmatprep.mubr.msk.f32.mxu1 %vm14431_vm1, %v14432_v22  ;;  %v8479_v36 = vand.u32 4294901760, %v8478_v34 }
 0xb5c   : > { %13968 = vmatprep.subr.bf16.mxu1 %v14430_v12  ;;  %v9429_v19 = vand.u32 4294901760, %v9428_v60 }
 0xb5d   : > { %v8480_v38 = vsub.f32 %v8478_v34, %v8479_v36  ;;  %v13930_v41 = vpack.c.bf16 %v8479_v36, %v8472_v35 }
 0xb5e   : > { %v9430_v6 = vsub.f32 %v9428_v60, %v9429_v19 }
 0xb5f   : > { %13970 = vmatpush3.bf16.msra.mxu1 %v13939_v39  ;;  %v8481_v21 = vand.u32 4294901760, %v8480_v38 }
 0xb60   : > { %14007 = vmatprep.subr.bf16.mxu1 %v14430_v12  ;;  %v9431_v13 = vand.u32 4294901760, %v9430_v6 }
 0xb61   : > { %v13921_v39 = vpack.c.bf16 %v8481_v21, %v8474_v20 }
 0xb62   : > { %13321 = vmatmul.mubr.f32.vlgmr.msra.gmra.mrb[20].mxu1 %v14586_v51 }
 0xb63   : > { %14009 = vmatpush3.bf16.msra.mxu1 %v14008_v2  ;;  %13397 = vmatprep.mubr.msk.f32.mxu1 %vm14431_vm1, %v14432_v22 }
 0xb64   : > { %14010 = vmatprep.subr.bf16.mxu1 %v14430_v12 }
 0xb67   : > { %14012 = vmatpush3.bf16.msra.mxu1 %v14011_v7 }
 0xb68   : > { %14013 = vmatprep.subr.bf16.mxu1 %v14430_v12 }
 0xb6a   : > { %13398 = vmatmul.mubr.f32.vlgmr.msra.gmra.mrb[22].mxu1 %v14612_v61 }
 0xb6b   : > { %14015 = vmatpush3.bf16.msra.mxu1 %v14014_v14  ;;  %13408 = vmatprep.mubr.msk.f32.mxu1 %vm14431_vm1, %v14432_v22 }
 0xb6c   : > { %14016 = vmatprep.subr.bf16.mxu1 %v14430_v12 }
 0xb6f   : > { %14018 = vmatpush3.bf16.msra.mxu1 %v14017_v23 }
 0xb70   : > { %14019 = vmatprep.subr.bf16.mxu1 %v14430_v12 }
 0xb72   : > { %13409 = vmatmul.mubr.f32.vlgmr.msra.gmra.mrb[22].mxu1 %v14586_v51 }
 0xb73   : > { %14021 = vmatpush3.bf16.msra.mxu1 %v14020_v24  ;;  %13419 = vmatprep.mubr.msk.f32.mxu1 %vm14431_vm1, %v14432_v22  ;;  %v9445_v24 = vand.u32 4294901760, %v9444_v15 }
 0xb74   : > { %14022 = vmatprep.subr.bf16.mxu1 %v14430_v12 }
 0xb77   : > { %14024 = vmatpush3.bf16.msra.mxu1 %v14023_v11  ;;  %v9452_v11 = vand.u32 4294901760, %v9451_v16 }
 0xb78   : > { %14025 = vmatprep.subr.bf16.mxu1 %v14430_v12 }
 0xb7a   : > { %13420 = vmatmul.mubr.f32.vlgmr.msra.gmra.mrb[22].mxu1 %v14589_v52 }
 0xb7b   : > { %14027 = vmatpush3.bf16.msra.mxu1 %v14008_v2  ;;  %13430 = vmatprep.mubr.msk.f32.mxu1 %vm14431_vm1, %v14432_v22 }
 0xb7c   : > { %14028 = vmatprep.subr.bf16.mxu1 %v14430_v12 }
 0xb7f   : > { %14030 = vmatpush3.bf16.msra.mxu1 %v14011_v7 }
 0xb80   : > { %14031 = vmatprep.subr.bf16.mxu1 %v14430_v12 }
 0xb82   : > { %13431 = vmatmul.mubr.f32.vlgmr.msra.gmra.mrb[22].mxu1 %v14598_v55 }
 0xb83   : > { %14033 = vmatpush3.bf16.msra.mxu1 %v14032_v25  ;;  %13441 = vmatprep.mubr.msk.f32.mxu1 %vm14431_vm1, %v14432_v22  ;;  %v13981_v25 = vpack.c.bf16 %v9452_v11, %v9445_v24 }
 0xb84   : > { %14034 = vmatprep.subr.bf16.mxu1 %v14430_v12 }
 0xb87   : > { %14036 = vmatpush3.bf16.msra.mxu1 %v14035_v27  ;;  %v13984_v27 = vpack.c.bf16 %v9435_v62, %v9428_v60 }
 0xb88   : > { %14037 = vmatprep.subr.bf16.mxu1 %v14430_v12 }
 0xb8a   : > { %13442 = vmatmul.mubr.f32.vlgmr.msra.gmra.mrb[22].mxu1 %v14586_v51 }
 0xb8b   : > { %14039 = vmatpush3.bf16.msra.mxu1 %v14008_v2  ;;  %13452 = vmatprep.mubr.msk.f32.mxu1 %vm14431_vm1, %v14432_v22  ;;  %v9436_v2 = vand.u32 4294901760, %v9435_v62 }
 0xb8c   : > { %14040 = vmatprep.subr.bf16.mxu1 %v14430_v12 }
 0xb8d   : > { %v7934_v32 = vpop.xlane.xlu1 %7933 }
 0xb8e   : > { %14360 = vrcp.f32 %v7934_v32 }
 0xb8f   : > { %14042 = vmatpush3.bf16.msra.mxu1 %v14011_v7  ;;  %v9437_v7 = vsub.f32 %v9435_v62, %v9436_v2 }
 0xb91   : > { %v9438_v14 = vand.u32 4294901760, %v9437_v7 }
 0xb92   : > { %13453 = vmatmul.mubr.f32.vlgmr.msra.gmra.mrb[22].mxu1 %v14586_v51 }
 0xb93   : > { %v13978_v23 = vpack.c.bf16 %v9438_v14, %v9431_v13 }
 0xb98   : > { %v14361_v42 = vpop.eup %14360 }
 0xc05   : > { %v8380_v43 = vpop.f32.mrb[18].mxu1 }
 0xc06   : > { %v8385_v44 = vmul.f32 %v14361_v42, %v8380_v43  ;;  %v13214_v45 = vpop.f32.mrb[19].mxu1 }
 0xc08   : > { %v8390_v46 = vsel %vm1776_vm2, %v8385_v44, 0 }
 0xc09   : > { %v8459_v47 = vand.u32 4294901760, %v8390_v46 }
 0xc0b   : > { %v8460_v48 = vsub.f32 %v8390_v46, %v8459_v47 }
 0xc0d   : > { %v8461_v49 = vand.u32 4294901760, %v8460_v48 }
 0xc0f   : > { %v8462_v50 = vsub.f32 %v8460_v48, %v8461_v49 }
 0xc11   : > { %v8463_v29 = vand.u32 4294901760, %v8462_v50 }
 0xc13   : > { %13220 = vmatmul.mubr.f32.vlgmr.msra.gmra.mrb[8].mxu0 %v8463_v29 }
 0xc14   : > { %13922 = vmatpush3.bf16.msra.mxu0 %v13921_v39  ;;  %13226 = vmatprep.mubr.msk.f32.mxu0 %vm14431_vm1, %v14432_v22 }
 0xc15   : > { %13923 = vmatprep.subr.bf16.mxu0 %v14430_v12 }
 0xc1b   : > { %13227 = vmatmul.mubr.f32.vlgmr.msra.gmra.mrb[8].mxu0 %v8459_v47 }
 0xc1c   : > { %13925 = vmatpush3.bf16.msra.mxu0 %v13924_v26  ;;  %13233 = vmatprep.mubr.msk.f32.mxu0 %vm14431_vm1, %v14432_v22 }
 0xc1d   : > { %13926 = vmatprep.subr.bf16.mxu0 %v14430_v12 }
 0xc23   : > { %13234 = vmatmul.mubr.f32.vlgmr.msra.gmra.mrb[8].mxu0 %v8460_v48 }
 0xc24   : > { %13928 = vmatpush3.bf16.msra.mxu0 %v13918_v18  ;;  %13240 = vmatprep.mubr.msk.f32.mxu0 %vm14431_vm1, %v14432_v22 }
 0xc25   : > { %13929 = vmatprep.subr.bf16.mxu0 %v14430_v12 }
 0xc2b   : > { %13241 = vmatmul.mubr.f32.vlgmr.msra.gmra.mrb[8].mxu0 %v8461_v49 }
 0xc2c   : > { %13931 = vmatpush3.bf16.msra.mxu0 %v13930_v41  ;;  %13247 = vmatprep.mubr.msk.f32.mxu0 %vm14431_vm1, %v14432_v22 }
 0xc2d   : > { %13932 = vmatprep.subr.bf16.mxu0 %v14430_v12 }
 0xc33   : > { %13248 = vmatmul.mubr.f32.vlgmr.msra.gmra.mrb[8].mxu0 %v8459_v47 }
 0xc34   : > { %13934 = vmatpush3.bf16.msra.mxu0 %v13918_v18  ;;  %13254 = vmatprep.mubr.msk.f32.mxu0 %vm14431_vm1, %v14432_v22 }
 0xc35   : > { %v9338_v3 = vpop.f32.mrb[20].mxu1  ;;  %13971 = vmatprep.subr.bf16.mxu0 %v14430_v12 }
 0xc36   : > { %v13322_v4 = vpop.f32.mrb[21].mxu1  ;;  %v10323_v31 = vsel %vm1776_vm2, %v9338_v3, 0  ;;  %v11327_v3 = vsub.f32 %v11824_v0, %v11245_v1 }
 0xc37   : > { %v10394_v17 = vand.u32 4294901760, %v10323_v31 }
 0xc39   : > { %v10395_v18 = vsub.f32 %v10323_v31, %v10394_v17 }
 0xc3b   : > { %13255 = vmatmul.mubr.f32.vlgmr.msra.gmra.mrb[8].mxu0 %v8459_v47  ;;  %v10396_v33 = vand.u32 4294901760, %v10395_v18 }
 0xc3c   : > { %13973 = vmatpush3.bf16.msra.mxu0 %v13972_v5  ;;  %13331 = vmatprep.mubr.msk.f32.mxu0 %vm14431_vm1, %v14432_v22 }
 0xc3d   : > { %13974 = vmatprep.subr.bf16.mxu0 %v14430_v12  ;;  %v10397_v35 = vsub.f32 %v10395_v18, %v10396_v33 }
 0xc3f   : > { %v10398_v21 = vand.u32 4294901760, %v10397_v35 }
 0xc40   : > { %13976 = vmatpush3.bf16.msra.mxu0 %v13975_v10 }
 0xc41   : > { %13977 = vmatprep.subr.bf16.mxu0 %v14430_v12 }
 0xc43   : > { %13332 = vmatmul.mubr.f32.vlgmr.msra.gmra.mrb[14].mxu0 %v14612_v61  ;;  %v13996_v61 = vpack.c.bf16 %v9436_v2, %v9429_v19  ;;  %v14044_v19 = vpack.c.bf16 %v11245_v1, %v11242_v40  ;;  %v11320_v2 = vsub.f32 %v11823_v63, %v11242_v40 }
 0xc44   : > { %13979 = vmatpush3.bf16.msra.mxu0 %v13978_v23  ;;  %13342 = vmatprep.mubr.msk.f32.mxu0 %vm14431_vm1, %v14432_v22 }
 0xc45   : > { %13980 = vmatprep.subr.bf16.mxu0 %v14430_v12  ;;  %v11321_v4 = vand.u32 4294901760, %v11320_v2  ;;  %v14050_v13 = vpack.c.bf16 %v11327_v3, %v11320_v2 }
 0xc47   : > { %v11322_v6 = vsub.f32 %v11320_v2, %v11321_v4 }
 0xc48   : > { %13982 = vmatpush3.bf16.msra.mxu0 %v13981_v25 }
 0xc49   : > { %13983 = vmatprep.subr.bf16.mxu0 %v14430_v12  ;;  %v11323_v8 = vand.u32 4294901760, %v11322_v6 }
 0xc4b   : > { %13343 = vmatmul.mubr.f32.vlgmr.msra.gmra.mrb[14].mxu0 %v14586_v51 }
 0xc4c   : > { %13985 = vmatpush3.bf16.msra.mxu0 %v13984_v27  ;;  %13353 = vmatprep.mubr.msk.f32.mxu0 %vm14431_vm1, %v14432_v22 }
 0xc4d   : > { %13986 = vmatprep.subr.bf16.mxu0 %v14430_v12 }
 0xc50   : > { %13988 = vmatpush3.bf16.msra.mxu0 %v13987_v28 }
 0xc51   : > { %13989 = vmatprep.subr.bf16.mxu0 %v14430_v12 }
 0xc53   : > { %13354 = vmatmul.mubr.f32.vlgmr.msra.gmra.mrb[14].mxu0 %v14589_v52 }
 0xc54   : > { %13991 = vmatpush3.bf16.msra.mxu0 %v13972_v5  ;;  %13364 = vmatprep.mubr.msk.f32.mxu0 %vm14431_vm1, %v14432_v22 }
 0xc55   : > { %13992 = vmatprep.subr.bf16.mxu0 %v14430_v12 }
 0xc58   : > { %13994 = vmatpush3.bf16.msra.mxu0 %v13975_v10 }
 0xc59   : > { %13995 = vmatprep.subr.bf16.mxu0 %v14430_v12 }
 0xc5b   : > { %13365 = vmatmul.mubr.f32.vlgmr.msra.gmra.mrb[14].mxu0 %v14598_v55 }
 0xc5c   : > { %13997 = vmatpush3.bf16.msra.mxu0 %v13996_v61  ;;  %13375 = vmatprep.mubr.msk.f32.mxu0 %vm14431_vm1, %v14432_v22 }
 0xc5d   : > { %13998 = vmatprep.subr.bf16.mxu0 %v14430_v12 }
 0xc60   : > { %14000 = vmatpush3.bf16.msra.mxu0 %v13999_v30 }
 0xc61   : > { %14001 = vmatprep.subr.bf16.mxu0 %v14430_v12 }
 0xc63   : > { %13376 = vmatmul.mubr.f32.vlgmr.msra.gmra.mrb[14].mxu0 %v14586_v51 }
 0xc64   : > { %14003 = vmatpush3.bf16.msra.mxu0 %v13972_v5  ;;  %13386 = vmatprep.mubr.msk.f32.mxu0 %vm14431_vm1, %v14432_v22  ;;  %v11328_v5 = vand.u32 4294901760, %v11327_v3 }
 0xc65   : > { %v10318_v52 = vpop.f32.mrb[22].mxu1  ;;  %14004 = vmatprep.subr.bf16.mxu0 %v14430_v12 }
 0xc66   : > { %v13454_v55 = vpop.f32.mrb[23].mxu1  ;;  %v10788_v41 = vand.u32 4294901760, %v10318_v52  ;;  %v11329_v7 = vsub.f32 %v11327_v3, %v11328_v5  ;;  %v14056_v14 = vpack.c.bf16 %v11328_v5, %v11321_v4 }
 0xc68   : > { %14006 = vmatpush3.bf16.msra.mxu0 %v13975_v10  ;;  %v10865_v48 = vsub.f32 %v10318_v52, %v10788_v41  ;;  %v11330_v9 = vand.u32 4294901760, %v11329_v7 }
 0xc69   : > { %13455 = vmatprep.subr.mxu0 %v14432_v22 }
 0xc6a   : > { %v10866_v56 = vand.u32 4294901760, %v10865_v48  ;;  %v14047_v10 = vpack.c.bf16 %v11330_v9, %v11323_v8 }
 0xc6b   : > { %13387 = vmatmul.mubr.f32.vlgmr.msra.gmra.mrb[14].mxu0 %v14586_v51 }
 0xc6c   : > { %13457 = vmatprep.mubr.msk.f32.mxu0 %vm14431_vm1, %v14432_v22  ;;  %v10867_v59 = vsub.f32 %v10865_v48, %v10866_v56 }
 0xc6e   : > { %v10868_v62 = vand.u32 4294901760, %v10867_v59 }
 0xd3e   : > { %v9828_v34 = vpop.f32.mrb[14].mxu0 }
 0xd3f   : > { %v10326_v36 = vsel %vm1776_vm2, %v9828_v34, 0  ;;  %v13388_v37 = vpop.f32.mrb[15].mxu0 }
 0xd40   : > { %v10329_v38 = vand.u32 4294901760, %v10326_v36 }
 0xd42   : > { %v10406_v20 = vsub.f32 %v10326_v36, %v10329_v38  ;;  %13456 = vmatpush3.xpose.msra.mxu0 %v10329_v38 }
 0xd43   : > { %13460 = vmatprep.subr.mxu0 %v14432_v22 }
 0xd44   : > { %v10407_v51 = vand.u32 4294901760, %v10406_v20 }
 0xd45   : > { %13458 = vmatmul.mubr.f32.vlgmr.msra.gmra.mrb[16].mxu0 %v10398_v21 }
 0xd46   : > { %v10408_v39 = vsub.f32 %v10406_v20, %v10407_v51  ;;  %13462 = vmatprep.mubr.msk.f32.mxu0 %vm14431_vm1, %v14432_v22 }
 0xd48   : > { %v10409_v26 = vand.u32 4294901760, %v10408_v39 }
 0xd4a   : > { %13461 = vmatpush3.xpose.msra.mxu0 %v10409_v26 }
 0xd4b   : > { %13465 = vmatprep.subr.mxu0 %v14432_v22 }
 0xd4d   : > { %13463 = vmatmul.mubr.f32.vlgmr.msra.gmra.mrb[16].mxu0 %v10394_v17 }
 0xd4e   : > { %13466 = vmatpush3.xpose.msra.mxu0 %v10406_v20  ;;  %13467 = vmatprep.mubr.msk.f32.mxu0 %vm14431_vm1, %v14432_v22 }
 0xd4f   : > { %13470 = vmatprep.subr.mxu0 %v14432_v22 }
 0xd55   : > { %13468 = vmatmul.mubr.f32.vlgmr.msra.gmra.mrb[16].mxu0 %v10395_v18 }
 0xd56   : > { %13471 = vmatpush3.xpose.msra.mxu0 %v10329_v38  ;;  %13472 = vmatprep.mubr.msk.f32.mxu0 %vm14431_vm1, %v14432_v22 }
 0xd57   : > { %13475 = vmatprep.subr.mxu0 %v14432_v22 }
 0xd5d   : > { %13473 = vmatmul.mubr.f32.vlgmr.msra.gmra.mrb[16].mxu0 %v10396_v33 }
 0xd5e   : > { %13476 = vmatpush3.xpose.msra.mxu0 %v10407_v51  ;;  %13477 = vmatprep.mubr.msk.f32.mxu0 %vm14431_vm1, %v14432_v22 }
 0xd5f   : > { %13480 = vmatprep.subr.mxu0 %v14432_v22 }
 0xd65   : > { %13478 = vmatmul.mubr.f32.vlgmr.msra.gmra.mrb[16].mxu0 %v10394_v17 }
 0xd66   : > { %13481 = vmatpush3.xpose.msra.mxu0 %v10329_v38  ;;  %13482 = vmatprep.mubr.msk.f32.mxu0 %vm14431_vm1, %v14432_v22 }
 0xd67   : > { %13485 = vmatprep.subr.mxu0 %v14432_v22 }
 0xd6d   : > { %13483 = vmatmul.mubr.f32.vlgmr.msra.gmra.mrb[16].mxu0 %v10394_v17 }
 0xd6e   : > { %13486 = vmatpush3.msra.mxu0 %v10788_v41  ;;  %13487 = vmatprep.mubr.msk.f32.mxu0 %vm14431_vm1, %v14432_v22 }
 0xd6f   : > { %13490 = vmatprep.subr.mxu0 %v14432_v22 }
 0xe40   : > { %v10770_v32 = vpop.f32.mrb[16].mxu0 }
 0xe41   : > { %v10774_v42 = vmul.f32 0.25, %v10770_v32  ;;  %v13484_v43 = vpop.f32.mrb[17].mxu0 }
 0xe43   : > { %v10775_v44 = vsel %vm2230_vm3, %v10774_v42, -inf }
 0xe44   : > { %10776 = vmax.xlane.f32.xlu0 %v10775_v44 }
 0xed1   : > { %v10777_v45 = vpop.xlane.xlu0 %10776 }
 0xed2   : > { %v10778_v46 = vsub.f32 %v10774_v42, %v10777_v45 }
 0xed4   : > { %v10779_v47 = vmul.f32 1.442695, %v10778_v46 }
 0xed6   : > { %14362 = vpow2.f32 %v10779_v47 }
 0xee0   : > { %v14363_v49 = vpop.eup %14362 }
 0xee1   : > { %v10785_v50 = vsel %vm2230_vm3, %v14363_v49, 0  ;;  %v10781_v29 = vsel %vm2230_vm3, %v14363_v49, 0.0 }
 0xee2   : > { %v10853_v53 = vand.u32 4294901760, %v10785_v50  ;;  %10782 = vadd.xlane.f32.xlu1 %v10781_v29 }
 0xee4   : > { %v10854_v57 = vsub.f32 %v10785_v50, %v10853_v53 }
 0xee6   : > { %v10855_v58 = vand.u32 4294901760, %v10854_v57 }
 0xee8   : > { %v10856_v54 = vsub.f32 %v10854_v57, %v10855_v58 }
 0xeea   : > { %v10857_v60 = vand.u32 4294901760, %v10856_v54 }
 0xeec   : > { %13488 = vmatmul.mubr.f32.vlgmr.msra.gmra.mrb[18].mxu0 %v10857_v60 }
 0xeed   : > { %13491 = vmatpush3.msra.mxu0 %v10868_v62  ;;  %13492 = vmatprep.mubr.msk.f32.mxu0 %vm14431_vm1, %v14432_v22 }
 0xeee   : > { %13495 = vmatprep.subr.mxu0 %v14432_v22 }
 0xef4   : > { %13493 = vmatmul.mubr.f32.vlgmr.msra.gmra.mrb[18].mxu0 %v10853_v53 }
 0xef5   : > { %13496 = vmatpush3.msra.mxu0 %v10865_v48  ;;  %13497 = vmatprep.mubr.msk.f32.mxu0 %vm14431_vm1, %v14432_v22 }
 0xef6   : > { %13500 = vmatprep.subr.mxu0 %v14432_v22 }
 0xefc   : > { %13498 = vmatmul.mubr.f32.vlgmr.msra.gmra.mrb[18].mxu0 %v10854_v57 }
 0xefd   : > { %13501 = vmatpush3.msra.mxu0 %v10788_v41  ;;  %13502 = vmatprep.mubr.msk.f32.mxu0 %vm14431_vm1, %v14432_v22 }
 0xefe   : > { %13505 = vmatprep.subr.mxu0 %v14432_v22 }
 0xf04   : > { %13503 = vmatmul.mubr.f32.vlgmr.msra.gmra.mrb[18].mxu0 %v10855_v58 }
 0xf05   : > { %13506 = vmatpush3.msra.mxu0 %v10866_v56  ;;  %13507 = vmatprep.mubr.msk.f32.mxu0 %vm14431_vm1, %v14432_v22 }
 0xf06   : > { %13510 = vmatprep.subr.mxu0 %v14432_v22 }
 0xf0c   : > { %13508 = vmatmul.mubr.f32.vlgmr.msra.gmra.mrb[18].mxu0 %v10853_v53 }
 0xf0d   : > { %13511 = vmatpush3.msra.mxu0 %v10788_v41  ;;  %13512 = vmatprep.mubr.msk.f32.mxu0 %vm14431_vm1, %v14432_v22 }
 0xf0e   : > { %14043 = vmatprep.subr.bf16.mxu0 %v14430_v12 }
 0xf14   : > { %13513 = vmatmul.mubr.f32.vlgmr.msra.gmra.mrb[18].mxu0 %v10853_v53 }
 0xf15   : > { %13519 = vmatprep.mubr.msk.f32.mxu0 %vm14431_vm1, %v14432_v22  ;;  %14045 = vmatpush3.bf16.msra.mxu0 %v14044_v19 }
 0xf16   : > { %14046 = vmatprep.subr.bf16.mxu0 %v14430_v12 }
 0xf6f   : > { %v10783_v15 = vpop.xlane.xlu1 %10782 }
 0xf70   : > { %14364 = vrcp.f32 %v10783_v15 }
 0xf7a   : > { %v14365_v16 = vpop.eup %14364 }
 0xfe7   : > { %v11229_v23 = vpop.f32.mrb[18].mxu0 }
 0xfe8   : > { %v11234_v24 = vmul.f32 %v14365_v16, %v11229_v23  ;;  %v13514_v11 = vpop.f32.mrb[19].mxu0 }
 0xfea   : > { %v11239_v25 = vsel %vm1776_vm2, %v11234_v24, 0 }
 0xfeb   : > { %v11308_v27 = vand.u32 4294901760, %v11239_v25 }
 0xfed   : > { %v11309_v28 = vsub.f32 %v11239_v25, %v11308_v27 }
 0xfef   : > { %v11310_v61 = vand.u32 4294901760, %v11309_v28 }
 0xff1   : > { %v11311_v30 = vsub.f32 %v11309_v28, %v11310_v61 }
 0xff3   : > { %v11312_v52 = vand.u32 4294901760, %v11311_v30 }
 0xff5   : > { %13520 = vmatmul.mubr.f32.vlgmr.msra.gmra.mrb[8].mxu0 %v11312_v52 }
 0xff6   : > { %14048 = vmatpush3.bf16.msra.mxu0 %v14047_v10  ;;  %13526 = vmatprep.mubr.msk.f32.mxu0 %vm14431_vm1, %v14432_v22 }
 0xff7   : > { %14049 = vmatprep.subr.bf16.mxu0 %v14430_v12 }
 0xffd   : > { %13527 = vmatmul.mubr.f32.vlgmr.msra.gmra.mrb[8].mxu0 %v11308_v27 }
 0xffe   : > { %14051 = vmatpush3.bf16.msra.mxu0 %v14050_v13  ;;  %13533 = vmatprep.mubr.msk.f32.mxu0 %vm14431_vm1, %v14432_v22 }
 0xfff   : > { %14052 = vmatprep.subr.bf16.mxu0 %v14430_v12 }
0x1005   : > { %13534 = vmatmul.mubr.f32.vlgmr.msra.gmra.mrb[8].mxu0 %v11309_v28 }
0x1006   : > { %14054 = vmatpush3.bf16.msra.mxu0 %v14044_v19  ;;  %13540 = vmatprep.mubr.msk.f32.mxu0 %vm14431_vm1, %v14432_v22 }
0x1007   : > { %14055 = vmatprep.subr.bf16.mxu0 %v14430_v12 }
0x100d   : > { %13541 = vmatmul.mubr.f32.vlgmr.msra.gmra.mrb[8].mxu0 %v11310_v61 }
0x100e   : > { %14057 = vmatpush3.bf16.msra.mxu0 %v14056_v14  ;;  %13547 = vmatprep.mubr.msk.f32.mxu0 %vm14431_vm1, %v14432_v22 }
0x100f   : > { %14058 = vmatprep.subr.bf16.mxu0 %v14430_v12 }
0x1015   : > { %13548 = vmatmul.mubr.f32.vlgmr.msra.gmra.mrb[8].mxu0 %v11308_v27 }
0x1016   : > { %14060 = vmatpush3.bf16.msra.mxu0 %v14044_v19  ;;  %13554 = vmatprep.mubr.msk.f32.mxu0 %vm14431_vm1, %v14432_v22 }
0x101d   : > { %13555 = vmatmul.mubr.f32.vlgmr.msra.gmra.mrb[8].mxu0 %v11308_v27 }
0x10f0   : > { %v11696_v12 = vpop.f32.mrb[8].mxu0 }
0x10f1   : > { %11701 = vst.msk [vmem:[%s269_s8] sm:$0xff] %vm275_vm0, %v11696_v12  ;;  %v13556_v22 = vpop.f32.mrb[9].mxu0 }
0x10f2   : > { %14379 = shalt.err (!%p14376_p3)
}
0x10f3   : > { %s14380_s20 = scalar_lea.hbm %s15507_s15, 128  ;;  %s14384_s23 = scalar_lea.hbm %s15557_s7, 256 }
0x10f4   : > { %p14381_p4 = scmp.ne.s32.totalorder %s15507_s15, %s14380_s20  ;;  %p14385_p9 = scmp.lt.u32.totalorder %s15507_s15, %s15557_s7 }
0x10f5   : > { %p14386_p10 = scmp.lt.u32.totalorder %s14384_s23, %s14380_s20  ;;  %p14388_p12 = scmp.lt.u32.totalorder %s14380_s20, %s15507_s15 }
0x10f6   : > { %p14382_p7 = pnand %p14381_p4, %p14512_p5 }
0x10f7   : > { %p14387_p11 = por %p14386_p10, %p14385_p9 }
0x10f8   : > { %p14383_p8 = pneg %p14382_p7 }
0x10f9   : > { %p14389_p13 = por %p14388_p12, %p14387_p11 }
0x10fb   : > { %p14390_p0 = pnand %p14389_p13, %p14383_p8 }
0x10fd   : > { %14393 = shalt.err (!%p14390_p0)
}
0x10fe   : > { %14306 = dma.vmem_to_hbm [thread:$0]  (%p14512_p5), %s15509_s9, 128, %s15507_s15, %s11703_s16  }
0x10ff PF: > { %p14312_p1 = scmp.ge.s32.totalorder %s14428_s27, 2  ;;  %s11728_s13 = sand.u32 1, %s14416_s24  }
0x1100   : > { %s11729_s14 = scalar_lea.sflag [#allocation3], %s11728_s13 }
0x1101   : > { %p14309_p2 = pnand %p14312_p1, %p14516_p6 }
0x1103   : > { %14411 = dma.done.wait (!%p14309_p2), %s11729_s14, 128  }
0x1104   : > { %14413 = vsyncadd (!%p14309_p2), %s11729_s14, 4294967168  ;;  %p17_p3 = scmp.ge.s32.totalorder %s14499_s30, 4   ;;  %s15560_s24 = smov %s14420_s25 }
0x1105   : > { %s15561_s25 = smov %s14424_s26  ;;  %s15562_s26 = smov %s14510_s10 }
0x1106   : > { %s15563_s27 = smov %s14499_s30  ;;  %19 = sbr.rel (!%p17_p3) target bundleno = 3 (0x3), region = 95 }
0x110d   :  { %11734 = vsyncpa [#allocation3], 1 }
0x110e   :  { %11736 = vsyncpa [#allocation3 + $0x1], 1 }

</bundles_post_ra>
